<compile_context>
chip_gen: v7x
topology: tpu7x:2x2x1
jax: 0.10.0
libtpu: 0.0.40
codegen_flags: <defaults>
</compile_context>

<pallas_src>
import math

import numpy as np
import jax
import jax.numpy as jnp
from jax import lax
from jax.experimental import pallas as pl
from jax.experimental.pallas import tpu as pltpu

_BN_EPS = 1e-5     # PyTorch BatchNorm1d default eps
_LANE = 128


def _round_up(n, m):
    return ((n + m - 1) // m) * m


# ------------------------------ fused kernel ------------------------------- #

def _make_kernel(*, tile_t, n_tiles, lb, ld, off_b, off_d, n_valid_b, n_valid_d):
    """Kernel over grid (phase, row_tile).  Phase p runs layer (p - offset) of
    each branch: layer 0..L-1 = Linear + stats accumulation (BN applied lazily
    next phase), layer L = BN-apply + tanh + final Linear (+ exp on diag for D).
    """
    inv_b = 1.0 / float(n_valid_b)
    inv_d = 1.0 / float(n_valid_d)

    def kernel(x_ref, wb_ref, sb_ref, wd_ref, sd_ref,
               b_out_ref, d_out_ref,
               act_b, act_d, acc_b, acc_d, ss_b, ss_d):
        p = pl.program_id(0)
        t = pl.program_id(1)
        row0 = pl.multiple_of(t * tile_t, tile_t)

        # Reset per-layer stats accumulators at the first row tile of every
        # phase (harmless in phases that do not accumulate).
        @pl.when(t == 0)
        def _():
            acc_b[...] = jnp.zeros_like(acc_b)
            acc_d[...] = jnp.zeros_like(acc_d)

        rows = lax.broadcasted_iota(jnp.int32, (tile_t, 1), 0) + row0

        def branch(x_channel, w_ref, s_ref, act, acc, ss, out_ref,
                   n_hidden, off, n_valid, inv_n, post_fn):
            k = p - off                       # this branch's layer index
            mask = (rows < n_valid).astype(jnp.float32)

            def accumulate(y):
                ym = y * mask
                acc[0:1, :] = acc[0:1, :] + jnp.sum(ym, axis=0, keepdims=True)
                acc[1:2, :] = acc[1:2, :] + jnp.sum(ym * y, axis=0, keepdims=True)

            def bn_tanh(y):
                # scale/shift were folded at the end of the previous phase.
                return jnp.tanh(y * ss[0:1, :] + ss[1:2, :])

            # ---- layer 0: consume the streamed input tile -----------------
            @pl.when(k == 0)
            def _():
                y = jnp.dot(x_ref[x_channel], w_ref[0],
                            preferred_element_type=jnp.float32)
                accumulate(y)
                act[pl.ds(row0, tile_t), :] = y

            # ---- hidden layers 1 .. n_hidden-1 -----------------------------
            @pl.when((k >= 1) & (k < n_hidden))
            def _():
                h = bn_tanh(act[pl.ds(row0, tile_t), :])
                y = jnp.dot(h, w_ref[k], preferred_element_type=jnp.float32)
                accumulate(y)
                act[pl.ds(row0, tile_t), :] = y

            # ---- end of a hidden-layer phase: finalize BN scale/shift ------
            @pl.when((t == n_tiles - 1) & (k >= 0) & (k < n_hidden))
            def _():
                mean = acc[0:1, :] * inv_n
                var = jnp.maximum(acc[1:2, :] * inv_n - mean * mean, 0.0)
                g = s_ref[pl.ds(2 * k, 1), :]
                be = s_ref[pl.ds(2 * k + 1, 1), :]
                scale = g * lax.rsqrt(var + _BN_EPS)
                ss[0:1, :] = scale
                ss[1:2, :] = be - mean * scale

            # ---- final Linear (always the last phase for this branch) ------
            @pl.when(k == n_hidden)
            def _():
                h = bn_tanh(act[pl.ds(row0, tile_t), :])
                out = jnp.dot(h, w_ref[n_hidden],
                              preferred_element_type=jnp.float32)
                out = out + s_ref[2 * n_hidden:2 * n_hidden + 1, :]
                out_ref[...] = post_fn(out)

        def d_post(out):
            # exp on the diagonal only (mask row precomputed in sideD).
            dm = sd_ref[2 * ld + 1:2 * ld + 2, :]
            return jnp.where(dm > 0.5, jnp.exp(out), out)

        branch(0, wb_ref, sb_ref, act_b, acc_b, ss_b, b_out_ref,
               lb, off_b, n_valid_b, inv_b, lambda o: o)
        branch(1, wd_ref, sd_ref, act_d, acc_d, ss_d, d_out_ref,
               ld, off_d, n_valid_d, inv_d, d_post)

    return kernel


# ------------------------- parameter init / packing ------------------------ #

def init_fcm(key, in_dim, out_dim, hidden_dims):
    """Raw (unpadded) params for: [Linear -> BN -> Tanh]*len(hidden_dims) -> Linear.
    Weights stored as (in, out); biases/gamma/beta as 1-D (out,)."""
    layers = []
    dims = [in_dim] + list(hidden_dims)
    for i in range(len(hidden_dims)):
        key, k1, k2 = jax.random.split(key, 3)
        bound = 1.0 / math.sqrt(dims[i])
        w = jax.random.uniform(k1, (dims[i], dims[i + 1]), jnp.float32, -bound, bound)
        b = jax.random.uniform(k2, (dims[i + 1],), jnp.float32, -bound, bound)
        gamma = jnp.ones((dims[i + 1],), jnp.float32)
        beta = jnp.zeros((dims[i + 1],), jnp.float32)
        layers.append((w, b, gamma, beta))
    key, k1, k2 = jax.random.split(key, 3)
    bound = 1.0 / math.sqrt(dims[-1])
    w = jax.random.uniform(k1, (dims[-1], out_dim), jnp.float32, -bound, bound)
    b = jax.random.uniform(k2, (out_dim,), jnp.float32, -bound, bound)
    layers.append((w, b))
    return layers


def _pack_branch(layers, feat, fold_matrix=None, extra_rows=()):
    """Stack layer weights into one (L+1, feat, feat) array (zero-padded) and
    pack per-layer gamma/beta plus the final bias (+ extra rows) into one
    (2L+1+len(extra_rows), feat) side array.

    NOTE: padded lanes must stay exactly ZERO (weights, gamma, beta, bias)
    so they remain 0 through BN+tanh and never leak into the next matmul.
    Hidden-layer Linear biases are intentionally dropped: a bias immediately
    followed by training-mode BatchNorm cancels exactly.
    """
    hidden = layers[:-1]
    wf, bf = layers[-1]
    if fold_matrix is not None:
        wf = wf @ fold_matrix
        bf = bf @ fold_matrix

    n_hidden = len(hidden)
    w_stack = np.zeros((n_hidden + 1, feat, feat), np.float32)
    side = np.zeros((2 * n_hidden + 1 + len(extra_rows), feat), np.float32)
    for i, (w, _b, g, be) in enumerate(hidden):
        w = np.asarray(w); g = np.asarray(g); be = np.asarray(be)
        w_stack[i, :w.shape[0], :w.shape[1]] = w
        side[2 * i, :g.shape[0]] = g
        side[2 * i + 1, :be.shape[0]] = be
    wf = np.asarray(wf); bf = np.asarray(bf)
    w_stack[n_hidden, :wf.shape[0], :wf.shape[1]] = wf
    side[2 * n_hidden, :bf.shape[0]] = bf
    for j, row in enumerate(extra_rows):
        row = np.asarray(row)
        side[2 * n_hidden + 1 + j, :row.shape[0]] = row
    return jnp.asarray(w_stack), jnp.asarray(side)


def init_inverse_variance_model(key, xt_dim, zt_dim, linear_layer_dims_B, linear_layer_dims_D):
    assert len(linear_layer_dims_B) >= 1 and len(linear_layer_dims_D) >= 1
    kB, kD, kWB, kWD = jax.random.split(key, 4)
    n_tril = zt_dim * (zt_dim + 1) // 2
    raw_B = init_fcm(kB, 2 * xt_dim, zt_dim ** 2, linear_layer_dims_B)
    raw_D = init_fcm(kD, xt_dim, n_tril, linear_layer_dims_D)

    feat = _round_up(max([2 * xt_dim, zt_dim ** 2, n_tril]
                         + list(linear_layer_dims_B) + list(linear_layer_dims_D)), _LANE)

    # Constant scatter matrix: tril-packed vector -> row-major flattened (z, z).
    # TODO(synk): Block_Lower_Triangle is not provided in the source; assume
    # row-major lower-triangle packing (torch.tril_indices order).
    rows, cols = np.tril_indices(zt_dim)
    S = np.zeros((n_tril, zt_dim * zt_dim), np.float32)
    S[np.arange(n_tril), rows * zt_dim + cols] = 1.0

    diag_mask = np.zeros((zt_dim * zt_dim,), np.float32)
    diag_mask[np.arange(zt_dim) * (zt_dim + 1)] = 1.0

    wb, sb = _pack_branch(raw_B, feat)
    wd, sd = _pack_branch(raw_D, feat, fold_matrix=S, extra_rows=(diag_mask,))

    return {
        "wb": wb, "sb": sb, "wd": wd, "sd": sd,
        "raw_B": raw_B, "raw_D": raw_D,
        "n_hidden_b": len(linear_layer_dims_B), "n_hidden_d": len(linear_layer_dims_D),
        "xt_dim": xt_dim, "zt_dim": zt_dim, "feat": feat,
        # Present in the PyTorch module but unused in its forward pass:
        "final_weights_B_z": jax.random.uniform(kWB, (zt_dim, zt_dim), jnp.float32),
        "final_weights_D_z": jax.random.uniform(kWD, (zt_dim, zt_dim), jnp.float32),
    }


# --------------------------------- forward --------------------------------- #

def inverse_variance_forward(params, x, *, row_tile=512):
    """x: (T, xt_dim) float32.  Returns (D: (T, z, z), B: (T-1, z, z))."""
    T = x.shape[0]
    assert T >= 2
    xt = params["xt_dim"]; z = params["zt_dim"]; feat = params["feat"]
    lb = params["n_hidden_b"]; ld = params["n_hidden_d"]
    zz = z * z

    tile_t = _round_up(min(row_tile, _round_up(T, 8)), 8)
    t_pad = _round_up(T, tile_t)
    n_tiles = t_pad // tile_t
    lmax = max(lb, ld)
    n_phases = lmax + 1

    # One lane-dense stacked input: channel 0 = concat(x[:-1], x[1:]) (B),
    # channel 1 = x (D); rows/lanes zero-padded.  Junk/padded rows are masked
    # out of the BN statistics in the kernel and sliced away below.
    x = x.astype(jnp.float32)
    x_both = jnp.zeros((2, t_pad, feat), jnp.float32)
    x_both = x_both.at[0, :T - 1, :xt].set(x[:-1, :])
    x_both = x_both.at[0, :T - 1, xt:2 * xt].set(x[1:, :])
    x_both = x_both.at[1, :T, :xt].set(x)

    kernel = _make_kernel(tile_t=tile_t, n_tiles=n_tiles, lb=lb, ld=ld,
                          off_b=lmax - lb, off_d=lmax - ld,
                          n_valid_b=T - 1, n_valid_d=T)

    const3 = lambda p, t: (0, 0, 0)
    const2 = lambda p, t: (0, 0)

    # VMEM budget (activation slabs + resident weights + pipeline buffers).
    est_bytes = 4 * (2 * t_pad * feat                      # activation slabs
                     + (lb + ld + 2) * feat * feat         # resident weights
                     + 8 * tile_t * feat                   # x / out buffers
                     + 16 * feat)
    vmem_limit = None
    if est_bytes > 16 * 1024 * 1024:
        vmem_limit = min(int(est_bytes * 1.5), 96 * 1024 * 1024)

    b_out, d_out = pl.pallas_call(
        kernel,
        grid=(n_phases, n_tiles),
        in_specs=[
            pl.BlockSpec((2, tile_t, feat), lambda p, t: (0, t, 0)),
            pl.BlockSpec(params["wb"].shape, const3),   # resident across grid
            pl.BlockSpec(params["sb"].shape, const2),
            pl.BlockSpec(params["wd"].shape, const3),
            pl.BlockSpec(params["sd"].shape, const2),
        ],
        out_specs=(
            pl.BlockSpec((tile_t, feat), lambda p, t: (t, 0)),
            pl.BlockSpec((tile_t, feat), lambda p, t: (t, 0)),
        ),
        out_shape=(
            jax.ShapeDtypeStruct((t_pad, feat), jnp.float32),
            jax.ShapeDtypeStruct((t_pad, feat), jnp.float32),
        ),
        scratch_shapes=[
            pltpu.VMEM((t_pad, feat), jnp.float32),   # act_b (inter-phase y)
            pltpu.VMEM((t_pad, feat), jnp.float32),   # act_d
            pltpu.VMEM((2, feat), jnp.float32),       # acc_b: [sum; sum of sq]
            pltpu.VMEM((2, feat), jnp.float32),       # acc_d
            pltpu.VMEM((2, feat), jnp.float32),       # ss_b:  [scale; shift]
            pltpu.VMEM((2, feat), jnp.float32),       # ss_d
        ],
        compiler_params=pltpu.CompilerParams(
            dimension_semantics=("arbitrary", "arbitrary"),
            vmem_limit_bytes=vmem_limit),
    )(x_both, params["wb"], params["sb"], params["wd"], params["sd"])

    B = b_out[:T - 1, :zz].reshape(T - 1, z, z)
    D = d_out[:T, :zz].reshape(T, z, z)
    return D, B


# ---------------------- pure-JAX reference (for checking) ------------------ #

def _fcm_reference(layers, x):
    for (w, b, g, be) in layers[:-1]:
        y = jnp.dot(x, w, precision=lax.Precision.HIGHEST) + b
        mean = jnp.mean(y, axis=0, keepdims=True)
        var = jnp.mean(jnp.square(y - mean), axis=0, keepdims=True)
        x = jnp.tanh(g * (y - mean) * lax.rsqrt(var + _BN_EPS) + be)
    w, b = layers[-1]
    return jnp.dot(x, w, precision=lax.Precision.HIGHEST) + b


def _reference_forward(params, x):
    z = params["zt_dim"]
    T = x.shape[0]
    xb = jnp.concatenate([x[:-1, :], x[1:, :]], axis=1)
    B = _fcm_reference(params["raw_B"], xb).reshape(T - 1, z, z)
    d_vec = _fcm_reference(params["raw_D"], x)
    r, c = np.tril_indices(z)
    D = jnp.zeros((T, z, z), jnp.float32).at[:, r, c].set(d_vec)
    dg = jnp.arange(z)
    D = D.at[:, dg, dg].set(jnp.exp(D[:, dg, dg]))
    return D, B


# ----------------------------------- main ----------------------------------- #

if __name__ == "__main__":
    key = jax.random.PRNGKey(0)

    # --- small config (module-scale tiny sizes, single row tile) ------------
    T, xt_dim, zt_dim = 8, 16, 4
    dims_B, dims_D = [32, 16], [32, 16]
    k_param, k_x, key = jax.random.split(key, 3)
    params = init_inverse_variance_model(k_param, xt_dim, zt_dim, dims_B, dims_D)
    x = jax.random.normal(k_x, (T, xt_dim), jnp.float32)

    D, B = inverse_variance_forward(params, x)
    jax.block_until_ready((D, B))

    assert D.shape == (T, zt_dim, zt_dim)
    assert B.shape == (T - 1, zt_dim, zt_dim)
    assert bool(jnp.all(jnp.triu(D, k=1) == 0.0))            # strictly lower triangular above diag
    dg = jnp.arange(zt_dim)
    assert bool(jnp.all(D[:, dg, dg] > 0.0))                  # exp-ed diagonal is positive

    D_ref, B_ref = _reference_forward(params, x)
    assert bool(jnp.allclose(B, B_ref, rtol=5e-3, atol=1e-3)), "B mismatch (small)"
    assert bool(jnp.allclose(D, D_ref, rtol=5e-3, atol=1e-3)), "D mismatch (small)"

    # --- larger config: exercises the (phase x row-tile) grid, row padding,
    #     masked two-pass BN stats and unequal branch depths ------------------
    T2, xt2, z2 = 600, 16, 4
    dims_B2, dims_D2 = [64, 32], [64, 48, 32]
    k_param2, k_x2, key = jax.random.split(key, 3)
    params2 = init_inverse_variance_model(k_param2, xt2, z2, dims_B2, dims_D2)
    x2 = jax.random.normal(k_x2, (T2, xt2), jnp.float32)

    D2, B2 = inverse_variance_forward(params2, x2, row_tile=256)
    jax.block_until_ready((D2, B2))
    D2_ref, B2_ref = _reference_forward(params2, x2)
    assert bool(jnp.allclose(B2, B2_ref, rtol=5e-3, atol=2e-3)), "B mismatch (tiled)"
    assert bool(jnp.allclose(D2, D2_ref, rtol=5e-3, atol=2e-3)), "D mismatch (tiled)"

    print("KERNEL_OK")
</pallas_src>

<mosaic_0001>
module attributes {stable_mosaic.version = 11 : i64} {
  func.func @kernel(%arg0: i32, %arg1: i32, %arg2: memref<2x8x128xf32, #tpu.memory_space<vmem>>, %arg3: memref<3x128x128xf32, #tpu.memory_space<vmem>>, %arg4: memref<5x128xf32, #tpu.memory_space<vmem>>, %arg5: memref<3x128x128xf32, #tpu.memory_space<vmem>>, %arg6: memref<6x128xf32, #tpu.memory_space<vmem>>, %arg7: memref<8x128xf32, #tpu.memory_space<vmem>>, %arg8: memref<8x128xf32, #tpu.memory_space<vmem>>, %arg9: memref<8x128xf32, #tpu.memory_space<vmem>>, %arg10: memref<8x128xf32, #tpu.memory_space<vmem>>, %arg11: memref<2x128xf32, #tpu.memory_space<vmem>>, %arg12: memref<2x128xf32, #tpu.memory_space<vmem>>, %arg13: memref<2x128xf32, #tpu.memory_space<vmem>>, %arg14: memref<2x128xf32, #tpu.memory_space<vmem>>) attributes {dimension_semantics = [#tpu.dimension_semantics<arbitrary>, #tpu.dimension_semantics<arbitrary>], iteration_bounds = array<i64: 3, 1>, scalar_prefetch = 0 : i64, scratch_operands = 6 : i64, tpu.core_type = #tpu.core_type<tc>, window_params = [{transform_indices = @transform_0, window_bounds = array<i64: 2, 8, 128>}, {pipeline_mode = #tpu.pipeline_mode<synchronous>, transform_indices = @transform_1, window_bounds = array<i64: 3, 128, 128>}, {pipeline_mode = #tpu.pipeline_mode<synchronous>, transform_indices = @transform_2, window_bounds = array<i64: 5, 128>}, {pipeline_mode = #tpu.pipeline_mode<synchronous>, transform_indices = @transform_3, window_bounds = array<i64: 3, 128, 128>}, {pipeline_mode = #tpu.pipeline_mode<synchronous>, transform_indices = @transform_4, window_bounds = array<i64: 6, 128>}, {transform_indices = @transform_5, window_bounds = array<i64: 8, 128>}, {transform_indices = @transform_6, window_bounds = array<i64: 8, 128>}]} {
    %c8_i32 = arith.constant 8 : i32
    %0 = arith.muli %arg1, %c8_i32 : i32
    %1 = tpu.assume_multiple %0, 8 : i32
    %c0_i32 = arith.constant 0 : i32
    %2 = arith.cmpi eq, %arg1, %c0_i32 : i32
    %3 = arith.extui %2 : i1 to i32
    %c0_i32_0 = arith.constant 0 : i32
    %4 = arith.cmpi ne, %3, %c0_i32_0 : i32
    scf.if %4 {
      %cst = arith.constant 0.000000e+00 : f32
      %54 = vector.broadcast %cst : f32 to vector<2x128xf32>
      %c0 = arith.constant 0 : index
      %c0_24 = arith.constant 0 : index
      %55 = vector.load %arg11[%c0, %c0_24] : memref<2x128xf32, #tpu.memory_space<vmem>>, vector<2x128xf32>
      tpu.vector_store %arg11[%c0, %c0_24], %54 {strides = array<i32>} : memref<2x128xf32, #tpu.memory_space<vmem>>, vector<2x128xf32>,
      %cst_25 = arith.constant 0.000000e+00 : f32
      %56 = vector.broadcast %cst_25 : f32 to vector<2x128xf32>
      %c0_26 = arith.constant 0 : index
      %c0_27 = arith.constant 0 : index
      %57 = vector.load %arg12[%c0_26, %c0_27] : memref<2x128xf32, #tpu.memory_space<vmem>>, vector<2x128xf32>
      tpu.vector_store %arg12[%c0_26, %c0_27], %56 {strides = array<i32>} : memref<2x128xf32, #tpu.memory_space<vmem>>, vector<2x128xf32>,
    } else {
    }
    %5 = tpu.iota {dimensions = array<i32: 0>} : vector<8x1xi32>
    %6 = vector.broadcast %1 : i32 to vector<8x1xi32>
    %7 = arith.addi %5, %6 : vector<8x1xi32>
    %c0_i32_1 = arith.constant 0 : i32
    %8 = arith.subi %arg0, %c0_i32_1 : i32
    %c7_i32 = arith.constant 7 : i32
    %9 = vector.broadcast %c7_i32 : i32 to vector<8x1xi32>
    %10 = arith.cmpi slt, %7, %9 : vector<8x1xi32>
    %11 = arith.extui %10 : vector<8x1xi1> to vector<8x1xi32>
    %12 = arith.sitofp %11 : vector<8x1xi32> to vector<8x1xf32>
    %c0_i32_2 = arith.constant 0 : i32
    %13 = arith.cmpi eq, %8, %c0_i32_2 : i32
    %14 = arith.extui %13 : i1 to i32
    %c0_i32_3 = arith.constant 0 : i32
    %15 = arith.cmpi ne, %14, %c0_i32_3 : i32
    scf.if %15 {
      %c0 = arith.constant 0 : index
      %c0_24 = arith.constant 0 : index
      %c0_25 = arith.constant 0 : index
      %54 = vector.load %arg2[%c0, %c0_24, %c0_25] : memref<2x8x128xf32, #tpu.memory_space<vmem>>, vector<1x8x128xf32>
      %55 = vector.shape_cast %54 : vector<1x8x128xf32> to vector<8x128xf32>
      %c0_26 = arith.constant 0 : index
      %c0_27 = arith.constant 0 : index
      %c0_28 = arith.constant 0 : index
      %56 = vector.load %arg3[%c0_26, %c0_27, %c0_28] : memref<3x128x128xf32, #tpu.memory_space<vmem>>, vector<1x128x128xf32>
      %57 = vector.shape_cast %56 : vector<1x128x128xf32> to vector<128x128xf32>
      %cst = arith.constant dense<0.000000e+00> : vector<8x128xf32>
      %58 = tpu.matmul %55, %57, %cst {dimension_numbers = #tpu.dot_dimension_numbers<[1], [0], [0], [1], [0, 0, 1, 1], [], []>} : vector<8x128xf32>, vector<128x128xf32>, vector<8x128xf32> -> vector<8x128xf32>
      %59 = vector.broadcast %12 : vector<8x1xf32> to vector<8x128xf32>
      %60 = arith.mulf %58, %59 : vector<8x128xf32>
      %c0_29 = arith.constant 0 : index
      %c0_30 = arith.constant 0 : index
      %61 = vector.load %arg11[%c0_29, %c0_30] : memref<2x128xf32, #tpu.memory_space<vmem>>, vector<1x128xf32>
      %cst_31 = arith.constant dense<0.000000e+00> : vector<128xf32>
      %62 = vector.multi_reduction <add>, %60, %cst_31 [0] : vector<8x128xf32> to vector<128xf32>
      %63 = vector.shape_cast %62 : vector<128xf32> to vector<1x128xf32>
      %64 = arith.addf %61, %63 : vector<1x128xf32>
      %c0_32 = arith.constant 0 : index
      %c0_33 = arith.constant 0 : index
      %65 = vector.load %arg11[%c0_32, %c0_33] : memref<2x128xf32, #tpu.memory_space<vmem>>, vector<1x128xf32>
      tpu.vector_store %arg11[%c0_32, %c0_33], %64 {strides = array<i32>} : memref<2x128xf32, #tpu.memory_space<vmem>>, vector<1x128xf32>,
      %c1 = arith.constant 1 : index
      %c0_34 = arith.constant 0 : index
      %66 = vector.load %arg11[%c1, %c0_34] : memref<2x128xf32, #tpu.memory_space<vmem>>, vector<1x128xf32>
      %67 = arith.mulf %60, %58 : vector<8x128xf32>
      %cst_35 = arith.constant dense<0.000000e+00> : vector<128xf32>
      %68 = vector.multi_reduction <add>, %67, %cst_35 [0] : vector<8x128xf32> to vector<128xf32>
      %69 = vector.shape_cast %68 : vector<128xf32> to vector<1x128xf32>
      %70 = arith.addf %66, %69 : vector<1x128xf32>
      %c1_36 = arith.constant 1 : index
      %c0_37 = arith.constant 0 : index
      %71 = vector.load %arg11[%c1_36, %c0_37] : memref<2x128xf32, #tpu.memory_space<vmem>>, vector<1x128xf32>
      tpu.vector_store %arg11[%c1_36, %c0_37], %70 {strides = array<i32>} : memref<2x128xf32, #tpu.memory_space<vmem>>, vector<1x128xf32>,
      %72 = arith.index_cast %1 : i32 to index
      %c0_38 = arith.constant 0 : index
      %73 = vector.load %arg9[%72, %c0_38] : memref<8x128xf32, #tpu.memory_space<vmem>>, vector<8x128xf32>
      tpu.vector_store %arg9[%72, %c0_38], %58 {strides = array<i32>} : memref<8x128xf32, #tpu.memory_space<vmem>>, vector<8x128xf32>,
    } else {
    }
    %c1_i32 = arith.constant 1 : i32
    %16 = arith.cmpi sge, %8, %c1_i32 : i32
    %c2_i32 = arith.constant 2 : i32
    %17 = arith.cmpi slt, %8, %c2_i32 : i32
    %18 = arith.andi %16, %17 : i1
    %19 = arith.extui %18 : i1 to i32
    %c0_i32_4 = arith.constant 0 : i32
    %20 = arith.cmpi ne, %19, %c0_i32_4 : i32
    scf.if %20 {
      %54 = arith.index_cast %1 : i32 to index
      %c0 = arith.constant 0 : index
      %55 = vector.load %arg9[%54, %c0] : memref<8x128xf32, #tpu.memory_space<vmem>>, vector<8x128xf32>
      %c0_24 = arith.constant 0 : index
      %c0_25 = arith.constant 0 : index
      %56 = vector.load %arg13[%c0_24, %c0_25] : memref<2x128xf32, #tpu.memory_space<vmem>>, vector<1x128xf32>
      %57 = vector.broadcast %56 : vector<1x128xf32> to vector<8x128xf32>
      %58 = arith.mulf %55, %57 : vector<8x128xf32>
      %c1 = arith.constant 1 : index
      %c0_26 = arith.constant 0 : index
      %59 = vector.load %arg13[%c1, %c0_26] : memref<2x128xf32, #tpu.memory_space<vmem>>, vector<1x128xf32>
      %60 = vector.broadcast %59 : vector<1x128xf32> to vector<8x128xf32>
      %61 = arith.addf %58, %60 : vector<8x128xf32>
      %62 = math.tanh %61 : vector<8x128xf32>
      %63 = arith.index_cast %8 : i32 to index
      %c0_27 = arith.constant 0 : index
      %c0_28 = arith.constant 0 : index
      %64 = vector.load %arg3[%63, %c0_27, %c0_28] : memref<3x128x128xf32, #tpu.memory_space<vmem>>, vector<1x128x128xf32>
      %65 = vector.shape_cast %64 : vector<1x128x128xf32> to vector<128x128xf32>
      %cst = arith.constant dense<0.000000e+00> : vector<8x128xf32>
      %66 = tpu.matmul %62, %65, %cst {dimension_numbers = #tpu.dot_dimension_numbers<[1], [0], [0], [1], [0, 0, 1, 1], [], []>} : vector<8x128xf32>, vector<128x128xf32>, vector<8x128xf32> -> vector<8x128xf32>
      %67 = vector.broadcast %12 : vector<8x1xf32> to vector<8x128xf32>
      %68 = arith.mulf %66, %67 : vector<8x128xf32>
      %c0_29 = arith.constant 0 : index
      %c0_30 = arith.constant 0 : index
      %69 = vector.load %arg11[%c0_29, %c0_30] : memref<2x128xf32, #tpu.memory_space<vmem>>, vector<1x128xf32>
      %cst_31 = arith.constant dense<0.000000e+00> : vector<128xf32>
      %70 = vector.multi_reduction <add>, %68, %cst_31 [0] : vector<8x128xf32> to vector<128xf32>
      %71 = vector.shape_cast %70 : vector<128xf32> to vector<1x128xf32>
      %72 = arith.addf %69, %71 : vector<1x128xf32>
      %c0_32 = arith.constant 0 : index
      %c0_33 = arith.constant 0 : index
      %73 = vector.load %arg11[%c0_32, %c0_33] : memref<2x128xf32, #tpu.memory_space<vmem>>, vector<1x128xf32>
      tpu.vector_store %arg11[%c0_32, %c0_33], %72 {strides = array<i32>} : memref<2x128xf32, #tpu.memory_space<vmem>>, vector<1x128xf32>,
      %c1_34 = arith.constant 1 : index
      %c0_35 = arith.constant 0 : index
      %74 = vector.load %arg11[%c1_34, %c0_35] : memref<2x128xf32, #tpu.memory_space<vmem>>, vector<1x128xf32>
      %75 = arith.mulf %68, %66 : vector<8x128xf32>
      %cst_36 = arith.constant dense<0.000000e+00> : vector<128xf32>
      %76 = vector.multi_reduction <add>, %75, %cst_36 [0] : vector<8x128xf32> to vector<128xf32>
      %77 = vector.shape_cast %76 : vector<128xf32> to vector<1x128xf32>
      %78 = arith.addf %74, %77 : vector<1x128xf32>
      %c1_37 = arith.constant 1 : index
      %c0_38 = arith.constant 0 : index
      %79 = vector.load %arg11[%c1_37, %c0_38] : memref<2x128xf32, #tpu.memory_space<vmem>>, vector<1x128xf32>
      tpu.vector_store %arg11[%c1_37, %c0_38], %78 {strides = array<i32>} : memref<2x128xf32, #tpu.memory_space<vmem>>, vector<1x128xf32>,
      %80 = arith.index_cast %1 : i32 to index
      %c0_39 = arith.constant 0 : index
      %81 = vector.load %arg9[%80, %c0_39] : memref<8x128xf32, #tpu.memory_space<vmem>>, vector<8x128xf32>
      tpu.vector_store %arg9[%80, %c0_39], %66 {strides = array<i32>} : memref<8x128xf32, #tpu.memory_space<vmem>>, vector<8x128xf32>,
    } else {
    }
    %c0_i32_5 = arith.constant 0 : i32
    %21 = arith.cmpi eq, %arg1, %c0_i32_5 : i32
    %c0_i32_6 = arith.constant 0 : i32
    %22 = arith.cmpi sge, %8, %c0_i32_6 : i32
    %23 = arith.andi %21, %22 : i1
    %c2_i32_7 = arith.constant 2 : i32
    %24 = arith.cmpi slt, %8, %c2_i32_7 : i32
    %25 = arith.andi %23, %24 : i1
    %26 = arith.extui %25 : i1 to i32
    %c0_i32_8 = arith.constant 0 : i32
    %27 = arith.cmpi ne, %26, %c0_i32_8 : i32
    scf.if %27 {
      %c0 = arith.constant 0 : index
      %c0_24 = arith.constant 0 : index
      %54 = vector.load %arg11[%c0, %c0_24] : memref<2x128xf32, #tpu.memory_space<vmem>>, vector<1x128xf32>
      %cst = arith.constant 0.142857149 : f32
      %55 = vector.broadcast %cst : f32 to vector<1x128xf32>
      %56 = arith.mulf %54, %55 : vector<1x128xf32>
      %c1 = arith.constant 1 : index
      %c0_25 = arith.constant 0 : index
      %57 = vector.load %arg11[%c1, %c0_25] : memref<2x128xf32, #tpu.memory_space<vmem>>, vector<1x128xf32>
      %cst_26 = arith.constant 0.142857149 : f32
      %58 = vector.broadcast %cst_26 : f32 to vector<1x128xf32>
      %59 = arith.mulf %57, %58 : vector<1x128xf32>
      %60 = arith.mulf %56, %56 : vector<1x128xf32>
      %61 = arith.subf %59, %60 : vector<1x128xf32>
      %cst_27 = arith.constant 0.000000e+00 : f32
      %62 = vector.broadcast %cst_27 : f32 to vector<1x128xf32>
      %63 = arith.maximumf %61, %62 : vector<1x128xf32>
      %c2_i32_28 = arith.constant 2 : i32
      %64 = arith.muli %c2_i32_28, %8 : i32
      %65 = arith.index_cast %64 : i32 to index
      %c0_29 = arith.constant 0 : index
      %66 = vector.load %arg4[%65, %c0_29] : memref<5x128xf32, #tpu.memory_space<vmem>>, vector<1x128xf32>
      %c2_i32_30 = arith.constant 2 : i32
      %67 = arith.muli %c2_i32_30, %8 : i32
      %c1_i32_31 = arith.constant 1 : i32
      %68 = arith.addi %67, %c1_i32_31 : i32
      %69 = arith.index_cast %68 : i32 to index
      %c0_32 = arith.constant 0 : index
      %70 = vector.load %arg4[%69, %c0_32] : memref<5x128xf32, #tpu.memory_space<vmem>>, vector<1x128xf32>
      %cst_33 = arith.constant 9.99999974E-6 : f32
      %71 = vector.broadcast %cst_33 : f32 to vector<1x128xf32>
      %72 = arith.addf %63, %71 : vector<1x128xf32>
      %73 = math.rsqrt %72 : vector<1x128xf32>
      %74 = arith.mulf %66, %73 : vector<1x128xf32>
      %c0_34 = arith.constant 0 : index
      %c0_35 = arith.constant 0 : index
      %75 = vector.load %arg13[%c0_34, %c0_35] : memref<2x128xf32, #tpu.memory_space<vmem>>, vector<1x128xf32>
      tpu.vector_store %arg13[%c0_34, %c0_35], %74 {strides = array<i32>} : memref<2x128xf32, #tpu.memory_space<vmem>>, vector<1x128xf32>,
      %76 = arith.mulf %56, %74 : vector<1x128xf32>
      %77 = arith.subf %70, %76 : vector<1x128xf32>
      %c1_36 = arith.constant 1 : index
      %c0_37 = arith.constant 0 : index
      %78 = vector.load %arg13[%c1_36, %c0_37] : memref<2x128xf32, #tpu.memory_space<vmem>>, vector<1x128xf32>
      tpu.vector_store %arg13[%c1_36, %c0_37], %77 {strides = array<i32>} : memref<2x128xf32, #tpu.memory_space<vmem>>, vector<1x128xf32>,
    } else {
    }
    %c2_i32_9 = arith.constant 2 : i32
    %28 = arith.cmpi eq, %8, %c2_i32_9 : i32
    %29 = arith.extui %28 : i1 to i32
    %c0_i32_10 = arith.constant 0 : i32
    %30 = arith.cmpi ne, %29, %c0_i32_10 : i32
    scf.if %30 {
      %54 = arith.index_cast %1 : i32 to index
      %c0 = arith.constant 0 : index
      %55 = vector.load %arg9[%54, %c0] : memref<8x128xf32, #tpu.memory_space<vmem>>, vector<8x128xf32>
      %c0_24 = arith.constant 0 : index
      %c0_25 = arith.constant 0 : index
      %56 = vector.load %arg13[%c0_24, %c0_25] : memref<2x128xf32, #tpu.memory_space<vmem>>, vector<1x128xf32>
      %57 = vector.broadcast %56 : vector<1x128xf32> to vector<8x128xf32>
      %58 = arith.mulf %55, %57 : vector<8x128xf32>
      %c1 = arith.constant 1 : index
      %c0_26 = arith.constant 0 : index
      %59 = vector.load %arg13[%c1, %c0_26] : memref<2x128xf32, #tpu.memory_space<vmem>>, vector<1x128xf32>
      %60 = vector.broadcast %59 : vector<1x128xf32> to vector<8x128xf32>
      %61 = arith.addf %58, %60 : vector<8x128xf32>
      %62 = math.tanh %61 : vector<8x128xf32>
      %c2 = arith.constant 2 : index
      %c0_27 = arith.constant 0 : index
      %c0_28 = arith.constant 0 : index
      %63 = vector.load %arg3[%c2, %c0_27, %c0_28] : memref<3x128x128xf32, #tpu.memory_space<vmem>>, vector<1x128x128xf32>
      %64 = vector.shape_cast %63 : vector<1x128x128xf32> to vector<128x128xf32>
      %cst = arith.constant dense<0.000000e+00> : vector<8x128xf32>
      %65 = tpu.matmul %62, %64, %cst {dimension_numbers = #tpu.dot_dimension_numbers<[1], [0], [0], [1], [0, 0, 1, 1], [], []>} : vector<8x128xf32>, vector<128x128xf32>, vector<8x128xf32> -> vector<8x128xf32>
      %c4 = arith.constant 4 : index
      %c0_29 = arith.constant 0 : index
      %66 = vector.load %arg4[%c4, %c0_29] : memref<5x128xf32, #tpu.memory_space<vmem>>, vector<1x128xf32>
      %67 = vector.broadcast %66 : vector<1x128xf32> to vector<8x128xf32>
      %68 = arith.addf %65, %67 : vector<8x128xf32>
      %c0_30 = arith.constant 0 : index
      %c0_31 = arith.constant 0 : index
      %69 = vector.load %arg7[%c0_30, %c0_31] : memref<8x128xf32, #tpu.memory_space<vmem>>, vector<8x128xf32>
      tpu.vector_store %arg7[%c0_30, %c0_31], %68 {strides = array<i32>} : memref<8x128xf32, #tpu.memory_space<vmem>>, vector<8x128xf32>,
    } else {
    }
    %c0_i32_11 = arith.constant 0 : i32
    %31 = arith.subi %arg0, %c0_i32_11 : i32
    %c8_i32_12 = arith.constant 8 : i32
    %32 = vector.broadcast %c8_i32_12 : i32 to vector<8x1xi32>
    %33 = arith.cmpi slt, %7, %32 : vector<8x1xi32>
    %34 = arith.extui %33 : vector<8x1xi1> to vector<8x1xi32>
    %35 = arith.sitofp %34 : vector<8x1xi32> to vector<8x1xf32>
    %c0_i32_13 = arith.constant 0 : i32
    %36 = arith.cmpi eq, %31, %c0_i32_13 : i32
    %37 = arith.extui %36 : i1 to i32
    %c0_i32_14 = arith.constant 0 : i32
    %38 = arith.cmpi ne, %37, %c0_i32_14 : i32
    scf.if %38 {
      %c1 = arith.constant 1 : index
      %c0 = arith.constant 0 : index
      %c0_24 = arith.constant 0 : index
      %54 = vector.load %arg2[%c1, %c0, %c0_24] : memref<2x8x128xf32, #tpu.memory_space<vmem>>, vector<1x8x128xf32>
      %55 = vector.shape_cast %54 : vector<1x8x128xf32> to vector<8x128xf32>
      %c0_25 = arith.constant 0 : index
      %c0_26 = arith.constant 0 : index
      %c0_27 = arith.constant 0 : index
      %56 = vector.load %arg5[%c0_25, %c0_26, %c0_27] : memref<3x128x128xf32, #tpu.memory_space<vmem>>, vector<1x128x128xf32>
      %57 = vector.shape_cast %56 : vector<1x128x128xf32> to vector<128x128xf32>
      %cst = arith.constant dense<0.000000e+00> : vector<8x128xf32>
      %58 = tpu.matmul %55, %57, %cst {dimension_numbers = #tpu.dot_dimension_numbers<[1], [0], [0], [1], [0, 0, 1, 1], [], []>} : vector<8x128xf32>, vector<128x128xf32>, vector<8x128xf32> -> vector<8x128xf32>
      %59 = vector.broadcast %35 : vector<8x1xf32> to vector<8x128xf32>
      %60 = arith.mulf %58, %59 : vector<8x128xf32>
      %c0_28 = arith.constant 0 : index
      %c0_29 = arith.constant 0 : index
      %61 = vector.load %arg12[%c0_28, %c0_29] : memref<2x128xf32, #tpu.memory_space<vmem>>, vector<1x128xf32>
      %cst_30 = arith.constant dense<0.000000e+00> : vector<128xf32>
      %62 = vector.multi_reduction <add>, %60, %cst_30 [0] : vector<8x128xf32> to vector<128xf32>
      %63 = vector.shape_cast %62 : vector<128xf32> to vector<1x128xf32>
      %64 = arith.addf %61, %63 : vector<1x128xf32>
      %c0_31 = arith.constant 0 : index
      %c0_32 = arith.constant 0 : index
      %65 = vector.load %arg12[%c0_31, %c0_32] : memref<2x128xf32, #tpu.memory_space<vmem>>, vector<1x128xf32>
      tpu.vector_store %arg12[%c0_31, %c0_32], %64 {strides = array<i32>} : memref<2x128xf32, #tpu.memory_space<vmem>>, vector<1x128xf32>,
      %c1_33 = arith.constant 1 : index
      %c0_34 = arith.constant 0 : index
      %66 = vector.load %arg12[%c1_33, %c0_34] : memref<2x128xf32, #tpu.memory_space<vmem>>, vector<1x128xf32>
      %67 = arith.mulf %60, %58 : vector<8x128xf32>
      %cst_35 = arith.constant dense<0.000000e+00> : vector<128xf32>
      %68 = vector.multi_reduction <add>, %67, %cst_35 [0] : vector<8x128xf32> to vector<128xf32>
      %69 = vector.shape_cast %68 : vector<128xf32> to vector<1x128xf32>
      %70 = arith.addf %66, %69 : vector<1x128xf32>
      %c1_36 = arith.constant 1 : index
      %c0_37 = arith.constant 0 : index
      %71 = vector.load %arg12[%c1_36, %c0_37] : memref<2x128xf32, #tpu.memory_space<vmem>>, vector<1x128xf32>
      tpu.vector_store %arg12[%c1_36, %c0_37], %70 {strides = array<i32>} : memref<2x128xf32, #tpu.memory_space<vmem>>, vector<1x128xf32>,
      %72 = arith.index_cast %1 : i32 to index
      %c0_38 = arith.constant 0 : index
      %73 = vector.load %arg10[%72, %c0_38] : memref<8x128xf32, #tpu.memory_space<vmem>>, vector<8x128xf32>
      tpu.vector_store %arg10[%72, %c0_38], %58 {strides = array<i32>} : memref<8x128xf32, #tpu.memory_space<vmem>>, vector<8x128xf32>,
    } else {
    }
    %c1_i32_15 = arith.constant 1 : i32
    %39 = arith.cmpi sge, %31, %c1_i32_15 : i32
    %c2_i32_16 = arith.constant 2 : i32
    %40 = arith.cmpi slt, %31, %c2_i32_16 : i32
    %41 = arith.andi %39, %40 : i1
    %42 = arith.extui %41 : i1 to i32
    %c0_i32_17 = arith.constant 0 : i32
    %43 = arith.cmpi ne, %42, %c0_i32_17 : i32
    scf.if %43 {
      %54 = arith.index_cast %1 : i32 to index
      %c0 = arith.constant 0 : index
      %55 = vector.load %arg10[%54, %c0] : memref<8x128xf32, #tpu.memory_space<vmem>>, vector<8x128xf32>
      %c0_24 = arith.constant 0 : index
      %c0_25 = arith.constant 0 : index
      %56 = vector.load %arg14[%c0_24, %c0_25] : memref<2x128xf32, #tpu.memory_space<vmem>>, vector<1x128xf32>
      %57 = vector.broadcast %56 : vector<1x128xf32> to vector<8x128xf32>
      %58 = arith.mulf %55, %57 : vector<8x128xf32>
      %c1 = arith.constant 1 : index
      %c0_26 = arith.constant 0 : index
      %59 = vector.load %arg14[%c1, %c0_26] : memref<2x128xf32, #tpu.memory_space<vmem>>, vector<1x128xf32>
      %60 = vector.broadcast %59 : vector<1x128xf32> to vector<8x128xf32>
      %61 = arith.addf %58, %60 : vector<8x128xf32>
      %62 = math.tanh %61 : vector<8x128xf32>
      %63 = arith.index_cast %31 : i32 to index
      %c0_27 = arith.constant 0 : index
      %c0_28 = arith.constant 0 : index
      %64 = vector.load %arg5[%63, %c0_27, %c0_28] : memref<3x128x128xf32, #tpu.memory_space<vmem>>, vector<1x128x128xf32>
      %65 = vector.shape_cast %64 : vector<1x128x128xf32> to vector<128x128xf32>
      %cst = arith.constant dense<0.000000e+00> : vector<8x128xf32>
      %66 = tpu.matmul %62, %65, %cst {dimension_numbers = #tpu.dot_dimension_numbers<[1], [0], [0], [1], [0, 0, 1, 1], [], []>} : vector<8x128xf32>, vector<128x128xf32>, vector<8x128xf32> -> vector<8x128xf32>
      %67 = vector.broadcast %35 : vector<8x1xf32> to vector<8x128xf32>
      %68 = arith.mulf %66, %67 : vector<8x128xf32>
      %c0_29 = arith.constant 0 : index
      %c0_30 = arith.constant 0 : index
      %69 = vector.load %arg12[%c0_29, %c0_30] : memref<2x128xf32, #tpu.memory_space<vmem>>, vector<1x128xf32>
      %cst_31 = arith.constant dense<0.000000e+00> : vector<128xf32>
      %70 = vector.multi_reduction <add>, %68, %cst_31 [0] : vector<8x128xf32> to vector<128xf32>
      %71 = vector.shape_cast %70 : vector<128xf32> to vector<1x128xf32>
      %72 = arith.addf %69, %71 : vector<1x128xf32>
      %c0_32 = arith.constant 0 : index
      %c0_33 = arith.constant 0 : index
      %73 = vector.load %arg12[%c0_32, %c0_33] : memref<2x128xf32, #tpu.memory_space<vmem>>, vector<1x128xf32>
      tpu.vector_store %arg12[%c0_32, %c0_33], %72 {strides = array<i32>} : memref<2x128xf32, #tpu.memory_space<vmem>>, vector<1x128xf32>,
      %c1_34 = arith.constant 1 : index
      %c0_35 = arith.constant 0 : index
      %74 = vector.load %arg12[%c1_34, %c0_35] : memref<2x128xf32, #tpu.memory_space<vmem>>, vector<1x128xf32>
      %75 = arith.mulf %68, %66 : vector<8x128xf32>
      %cst_36 = arith.constant dense<0.000000e+00> : vector<128xf32>
      %76 = vector.multi_reduction <add>, %75, %cst_36 [0] : vector<8x128xf32> to vector<128xf32>
      %77 = vector.shape_cast %76 : vector<128xf32> to vector<1x128xf32>
      %78 = arith.addf %74, %77 : vector<1x128xf32>
      %c1_37 = arith.constant 1 : index
      %c0_38 = arith.constant 0 : index
      %79 = vector.load %arg12[%c1_37, %c0_38] : memref<2x128xf32, #tpu.memory_space<vmem>>, vector<1x128xf32>
      tpu.vector_store %arg12[%c1_37, %c0_38], %78 {strides = array<i32>} : memref<2x128xf32, #tpu.memory_space<vmem>>, vector<1x128xf32>,
      %80 = arith.index_cast %1 : i32 to index
      %c0_39 = arith.constant 0 : index
      %81 = vector.load %arg10[%80, %c0_39] : memref<8x128xf32, #tpu.memory_space<vmem>>, vector<8x128xf32>
      tpu.vector_store %arg10[%80, %c0_39], %66 {strides = array<i32>} : memref<8x128xf32, #tpu.memory_space<vmem>>, vector<8x128xf32>,
    } else {
    }
    %c0_i32_18 = arith.constant 0 : i32
    %44 = arith.cmpi eq, %arg1, %c0_i32_18 : i32
    %c0_i32_19 = arith.constant 0 : i32
    %45 = arith.cmpi sge, %31, %c0_i32_19 : i32
    %46 = arith.andi %44, %45 : i1
    %c2_i32_20 = arith.constant 2 : i32
    %47 = arith.cmpi slt, %31, %c2_i32_20 : i32
    %48 = arith.andi %46, %47 : i1
    %49 = arith.extui %48 : i1 to i32
    %c0_i32_21 = arith.constant 0 : i32
    %50 = arith.cmpi ne, %49, %c0_i32_21 : i32
    scf.if %50 {
      %c0 = arith.constant 0 : index
      %c0_24 = arith.constant 0 : index
      %54 = vector.load %arg12[%c0, %c0_24] : memref<2x128xf32, #tpu.memory_space<vmem>>, vector<1x128xf32>
      %cst = arith.constant 1.250000e-01 : f32
      %55 = vector.broadcast %cst : f32 to vector<1x128xf32>
      %56 = arith.mulf %54, %55 : vector<1x128xf32>
      %c1 = arith.constant 1 : index
      %c0_25 = arith.constant 0 : index
      %57 = vector.load %arg12[%c1, %c0_25] : memref<2x128xf32, #tpu.memory_space<vmem>>, vector<1x128xf32>
      %cst_26 = arith.constant 1.250000e-01 : f32
      %58 = vector.broadcast %cst_26 : f32 to vector<1x128xf32>
      %59 = arith.mulf %57, %58 : vector<1x128xf32>
      %60 = arith.mulf %56, %56 : vector<1x128xf32>
      %61 = arith.subf %59, %60 : vector<1x128xf32>
      %cst_27 = arith.constant 0.000000e+00 : f32
      %62 = vector.broadcast %cst_27 : f32 to vector<1x128xf32>
      %63 = arith.maximumf %61, %62 : vector<1x128xf32>
      %c2_i32_28 = arith.constant 2 : i32
      %64 = arith.muli %c2_i32_28, %31 : i32
      %65 = arith.index_cast %64 : i32 to index
      %c0_29 = arith.constant 0 : index
      %66 = vector.load %arg6[%65, %c0_29] : memref<6x128xf32, #tpu.memory_space<vmem>>, vector<1x128xf32>
      %c2_i32_30 = arith.constant 2 : i32
      %67 = arith.muli %c2_i32_30, %31 : i32
      %c1_i32_31 = arith.constant 1 : i32
      %68 = arith.addi %67, %c1_i32_31 : i32
      %69 = arith.index_cast %68 : i32 to index
      %c0_32 = arith.constant 0 : index
      %70 = vector.load %arg6[%69, %c0_32] : memref<6x128xf32, #tpu.memory_space<vmem>>, vector<1x128xf32>
      %cst_33 = arith.constant 9.99999974E-6 : f32
      %71 = vector.broadcast %cst_33 : f32 to vector<1x128xf32>
      %72 = arith.addf %63, %71 : vector<1x128xf32>
      %73 = math.rsqrt %72 : vector<1x128xf32>
      %74 = arith.mulf %66, %73 : vector<1x128xf32>
      %c0_34 = arith.constant 0 : index
      %c0_35 = arith.constant 0 : index
      %75 = vector.load %arg14[%c0_34, %c0_35] : memref<2x128xf32, #tpu.memory_space<vmem>>, vector<1x128xf32>
      tpu.vector_store %arg14[%c0_34, %c0_35], %74 {strides = array<i32>} : memref<2x128xf32, #tpu.memory_space<vmem>>, vector<1x128xf32>,
      %76 = arith.mulf %56, %74 : vector<1x128xf32>
      %77 = arith.subf %70, %76 : vector<1x128xf32>
      %c1_36 = arith.constant 1 : index
      %c0_37 = arith.constant 0 : index
      %78 = vector.load %arg14[%c1_36, %c0_37] : memref<2x128xf32, #tpu.memory_space<vmem>>, vector<1x128xf32>
      tpu.vector_store %arg14[%c1_36, %c0_37], %77 {strides = array<i32>} : memref<2x128xf32, #tpu.memory_space<vmem>>, vector<1x128xf32>,
    } else {
    }
    %c2_i32_22 = arith.constant 2 : i32
    %51 = arith.cmpi eq, %31, %c2_i32_22 : i32
    %52 = arith.extui %51 : i1 to i32
    %c0_i32_23 = arith.constant 0 : i32
    %53 = arith.cmpi ne, %52, %c0_i32_23 : i32
    scf.if %53 {
      %54 = arith.index_cast %1 : i32 to index
      %c0 = arith.constant 0 : index
      %55 = vector.load %arg10[%54, %c0] : memref<8x128xf32, #tpu.memory_space<vmem>>, vector<8x128xf32>
      %c0_24 = arith.constant 0 : index
      %c0_25 = arith.constant 0 : index
      %56 = vector.load %arg14[%c0_24, %c0_25] : memref<2x128xf32, #tpu.memory_space<vmem>>, vector<1x128xf32>
      %57 = vector.broadcast %56 : vector<1x128xf32> to vector<8x128xf32>
      %58 = arith.mulf %55, %57 : vector<8x128xf32>
      %c1 = arith.constant 1 : index
      %c0_26 = arith.constant 0 : index
      %59 = vector.load %arg14[%c1, %c0_26] : memref<2x128xf32, #tpu.memory_space<vmem>>, vector<1x128xf32>
      %60 = vector.broadcast %59 : vector<1x128xf32> to vector<8x128xf32>
      %61 = arith.addf %58, %60 : vector<8x128xf32>
      %62 = math.tanh %61 : vector<8x128xf32>
      %c2 = arith.constant 2 : index
      %c0_27 = arith.constant 0 : index
      %c0_28 = arith.constant 0 : index
      %63 = vector.load %arg5[%c2, %c0_27, %c0_28] : memref<3x128x128xf32, #tpu.memory_space<vmem>>, vector<1x128x128xf32>
      %64 = vector.shape_cast %63 : vector<1x128x128xf32> to vector<128x128xf32>
      %cst = arith.constant dense<0.000000e+00> : vector<8x128xf32>
      %65 = tpu.matmul %62, %64, %cst {dimension_numbers = #tpu.dot_dimension_numbers<[1], [0], [0], [1], [0, 0, 1, 1], [], []>} : vector<8x128xf32>, vector<128x128xf32>, vector<8x128xf32> -> vector<8x128xf32>
      %c4 = arith.constant 4 : index
      %c0_29 = arith.constant 0 : index
      %66 = vector.load %arg6[%c4, %c0_29] : memref<6x128xf32, #tpu.memory_space<vmem>>, vector<1x128xf32>
      %67 = vector.broadcast %66 : vector<1x128xf32> to vector<8x128xf32>
      %68 = arith.addf %65, %67 : vector<8x128xf32>
      %c5 = arith.constant 5 : index
      %c0_30 = arith.constant 0 : index
      %69 = vector.load %arg6[%c5, %c0_30] : memref<6x128xf32, #tpu.memory_space<vmem>>, vector<1x128xf32>
      %cst_31 = arith.constant 5.000000e-01 : f32
      %70 = vector.broadcast %cst_31 : f32 to vector<1x128xf32>
      %71 = arith.cmpf ogt, %69, %70 : vector<1x128xf32>
      %72 = math.exp %68 : vector<8x128xf32>
      %73 = vector.shape_cast %71 : vector<1x128xi1> to vector<1x128xi1>
      %74 = vector.broadcast %73 : vector<1x128xi1> to vector<8x128xi1>
      %75 = arith.select %74, %72, %68 : vector<8x128xi1>, vector<8x128xf32>
      %c0_32 = arith.constant 0 : index
      %c0_33 = arith.constant 0 : index
      %76 = vector.load %arg8[%c0_32, %c0_33] : memref<8x128xf32, #tpu.memory_space<vmem>>, vector<8x128xf32>
      tpu.vector_store %arg8[%c0_32, %c0_33], %75 {strides = array<i32>} : memref<8x128xf32, #tpu.memory_space<vmem>>, vector<8x128xf32>,
    } else {
    }
    return
  }
  func.func @transform_0(%arg0: i32, %arg1: i32) -> (i32, i32, i32) {
    %c0_i32 = arith.constant 0 : i32
    %c0_i32_0 = arith.constant 0 : i32
    %c0_i32_1 = arith.constant 0 : i32
    return %c0_i32, %arg1, %c0_i32_0 : i32, i32, i32
  }
  func.func @transform_1(%arg0: i32, %arg1: i32) -> (i32, i32, i32) {
    %c0_i32 = arith.constant 0 : i32
    %c0_i32_0 = arith.constant 0 : i32
    %c0_i32_1 = arith.constant 0 : i32
    %c0_i32_2 = arith.constant 0 : i32
    return %c0_i32, %c0_i32_0, %c0_i32_1 : i32, i32, i32
  }
  func.func @transform_2(%arg0: i32, %arg1: i32) -> (i32, i32) {
    %c0_i32 = arith.constant 0 : i32
    %c0_i32_0 = arith.constant 0 : i32
    %c0_i32_1 = arith.constant 0 : i32
    return %c0_i32, %c0_i32_0 : i32, i32
  }
  func.func @transform_3(%arg0: i32, %arg1: i32) -> (i32, i32, i32) {
    %c0_i32 = arith.constant 0 : i32
    %c0_i32_0 = arith.constant 0 : i32
    %c0_i32_1 = arith.constant 0 : i32
    %c0_i32_2 = arith.constant 0 : i32
    return %c0_i32, %c0_i32_0, %c0_i32_1 : i32, i32, i32
  }
  func.func @transform_4(%arg0: i32, %arg1: i32) -> (i32, i32) {
    %c0_i32 = arith.constant 0 : i32
    %c0_i32_0 = arith.constant 0 : i32
    %c0_i32_1 = arith.constant 0 : i32
    return %c0_i32, %c0_i32_0 : i32, i32
  }
  func.func @transform_5(%arg0: i32, %arg1: i32) -> (i32, i32) {
    %c0_i32 = arith.constant 0 : i32
    %c0_i32_0 = arith.constant 0 : i32
    return %arg1, %c0_i32 : i32, i32
  }
  func.func @transform_6(%arg0: i32, %arg1: i32) -> (i32, i32) {
    %c0_i32 = arith.constant 0 : i32
    %c0_i32_0 = arith.constant 0 : i32
    return %arg1, %c0_i32 : i32, i32
  }
}

</mosaic_0001>

<bundles_post_ra>
// kernel: tpu_custom_call.1
= control target key start
LH: loop header
LB: loop body
LE: loop exit
PB: predicated region body
PF: predicated region fallthrough
CT: control target
= control target key end

     0   :  { %12 = vsyncpa [#allocation9], 0  ;;  %s2420_s0 = inlined_call_operand.hbm [shape: f32[2,8,128], index: 0, kind: input, shape index: {}]   ;;  %s2421_s1 = inlined_call_operand.hbm [shape: f32[3,128,128], index: 1, kind: input, shape index: {}]   ;;  %s2422_s2 = inlined_call_operand.hbm [shape: f32[5,128], index: 2, kind: input, shape index: {}]   ;;  %s2423_s3 = inlined_call_operand.hbm [shape: f32[3,128,128], index: 3, kind: input, shape index: {}]   ;;  %s2424_s4 = inlined_call_operand.vmem [shape: f32[6,128], index: 4, kind: input, shape index: {}]   ;;  %s2425_s5 = inlined_call_operand.hbm [shape: f32[8,128], index: 5, kind: output, shape index: {0}]   ;;  %s2426_s6 = inlined_call_operand.hbm [shape: f32[8,128], index: 6, kind: output, shape index: {1}]  }
   0x1   :  { %13 = vsyncpa [#allocation12], 0 }
   0x2   :  { %14 = vsyncpa [#allocation15], 0 }
   0x3   :  { %15 = vsyncpa [#allocation10], 0 }
   0x4   :  { %16 = vsyncpa [#allocation18], 0  ;;  %s2111_s21 = smov 0   ;;  %s2113_s22 = smov 0  }
   0x5   :  { %s2115_s23 = smov 0  }
   0x6 LB: > { %s1227_s24 = sadd.s32 4294967295, %s2046_s23   ;;  %p1228_p0 = scmp.ge.s32.totalorder %s2046_s23, 1  ;;  %s2046_s23 = sphi %s2115_s23, %s22_s23   ;;  %s2042_s22 = sphi %s2113_s22, %s2441_s22   ;;  %s2038_s21 = sphi %s2111_s21, %s2440_s21  }
   0x7   : > { %p201_p1 = scmp.lt.s32.totalorder %s2046_s23, 4  ;;  %p2131_p2 = scmp.eq.s32.totalorder %s1227_s24, 0 }
   0x8   : > { %s2048_s27 = smov [#allocation11]   ;;  %s34_s30 = sadd.s32 1, %s2042_s22 }
   0x9   : > { %s2430_s25 = scalar_select %p2131_p2, 1, 0 }
   0xa   : > { %p2135_p3 = pnand %p1228_p0, %p201_p1  ;;  %s228_s28 = sshll.u32 %s2048_s27, 4  ;;  %s2139_s28 = int_to_ptr.vmem [resolvable:$true] %s228_s28 }
   0xb   : > { %p2150_p6 = scmp.ge.s32.totalorder %s34_s30, 3  ;;  %s2049_s8 = smov [#allocation8]  }
   0xc   : > { %s2431_s26 = scalar_select %p2135_p3, 1, 0 }
   0xd   : > { %p1749_p4 = pneg %p2135_p3  ;;  %s215_s9 = sshll.u32 %s2049_s8, 4  ;;  %s216_s9 = int_to_ptr.vmem [resolvable:$true] %s215_s9 }
   0xe   : > { %s1840_s12 = scalar_lea.hbm %s2421_s1, 6144 }
   0xf   : > { %p2145_p5 = pnand %p2131_p2, %p1749_p4  ;;  %p1841_p7 = scmp.ne.s32.totalorder %s2421_s1, %s1840_s12 }
  0x10   : > { %p1847_p11 = scmp.lt.u32.totalorder %s1840_s12, %s2421_s1 }
  0x11   : > { %p2162_p8 = pneg %p2145_p5 }
  0x13   : > { %p1843_p9 = pnand %p2162_p8, %p1841_p7 }
  0x15   : > { %p1844_p10 = pneg %p1843_p9 }
  0x17   : > { %p1849_p12 = pnand %p1847_p11, %p1844_p10 }
  0x19   : > { %1852 = shalt.err (!%p1849_p12)
}
  0x1a   : > { %s1853_s18 = scalar_lea.vmem %s2139_s28, 6144  ;;  %p1861_p4 = scmp.lt.s32.totalorder %s2139_s28, %s2139_s28 }
  0x1b   : > { %p1854_p13 = scmp.ne.s32.totalorder %s2139_s28, %s1853_s18  ;;  %p1862_p2 = scmp.lt.s32.totalorder %s1853_s18, %s1853_s18 }
  0x1d   : > { %p1856_p0 = pnand %p1854_p13, %p2162_p8  ;;  %p1863_p7 = por %p1862_p2, %p1861_p4 }
  0x1f   : > { %p1857_p1 = pneg %p1856_p0 }
  0x21   : > { %p1864_p9 = pnand %p1863_p7, %p1857_p1 }
  0x23   : > { %1867 = shalt.err (!%p1864_p9)
}
  0x24   : > { %s2050_s19 = smov 128   ;;  %s2051_s20 = smov 8  }
  0x25   : > { %1755 = dma.hbm_to_vmem [thread:$0]  (!%p2145_p5), %s2421_s1, 6144, %s2139_s28, [#allocation12], %s2050_s19, %s2050_s19, %s2051_s20  }
  0x26   : > { %s2443_s30 = smov (%p2150_p6, %s34_s30), 0  ;;  %s1868_s12 = scalar_lea.hbm %s2420_s0, 256 }
  0x27   : > { %p1869_p2 = scmp.ne.s32.totalorder %s2420_s0, %s1868_s12  ;;  %p1875_p12 = scmp.lt.u32.totalorder %s1868_s12, %s2420_s0 }
  0x29   : > { %p1871_p10 = pnand %p1869_p2, %p2162_p8 }
  0x2b   : > { %p1872_p11 = pneg %p1871_p10 }
  0x2d   : > { %p1877_p13 = pnand %p1875_p12, %p1872_p11 }
  0x2f   : > { %1880 = shalt.err (!%p1877_p13)
}
  0x30   : > { %s1881_s28 = scalar_lea.vmem %s216_s9, 256  ;;  %p1889_p4 = scmp.lt.s32.totalorder %s216_s9, %s216_s9 }
  0x31   : > { %p1882_p6 = scmp.ne.s32.totalorder %s216_s9, %s1881_s28  ;;  %p1890_p7 = scmp.lt.s32.totalorder %s1881_s28, %s1881_s28 }
  0x33   : > { %p1884_p0 = pnand %p1882_p6, %p2162_p8  ;;  %p1891_p9 = por %p1890_p7, %p1889_p4 }
  0x35   : > { %p1885_p1 = pneg %p1884_p0 }
  0x37   : > { %p1892_p3 = pnand %p1891_p9, %p1885_p1 }
  0x39   : > { %1895 = shalt.err (!%p1892_p3)
}
  0x3a   : > { %1752 = dma.hbm_to_vmem [thread:$0]  (!%p2145_p5), %s2420_s0, 256, %s216_s9, [#allocation9], %s2050_s19, %s2050_s19, %s2051_s20  }
  0x3b   : > { %s2052_s27 = smov [#allocation13]   ;;  %s2053_s10 = smov [#allocation14]  }
  0x3c   : > { %s242_s8 = sshll.u32 %s2052_s27, 4  ;;  %s252_s11 = sshll.u32 %s2053_s10, 4  ;;  %s243_s8 = int_to_ptr.vmem [resolvable:$true] %s242_s8  ;;  %s253_s11 = int_to_ptr.vmem [resolvable:$true] %s252_s11 }
  0x3d   : > { %s1896_s14 = scalar_lea.hbm %s2422_s2, 128 }
  0x3e   : > { %p1897_p3 = scmp.ne.s32.totalorder %s2422_s2, %s1896_s14  ;;  %p1903_p11 = scmp.lt.u32.totalorder %s1896_s14, %s2422_s2 }
  0x40   : > { %p1899_p2 = pnand %p1897_p3, %p2162_p8 }
  0x42   : > { %p1900_p10 = pneg %p1899_p2 }
  0x44   : > { %p1905_p12 = pnand %p1903_p11, %p1900_p10 }
  0x46   : > { %1908 = shalt.err (!%p1905_p12)
}
  0x47   : > { %s1909_s9 = scalar_lea.vmem %s243_s8, 128  ;;  %p1917_p1 = scmp.lt.s32.totalorder %s243_s8, %s243_s8 }
  0x48   : > { %p1910_p13 = scmp.ne.s32.totalorder %s243_s8, %s1909_s9  ;;  %p1918_p4 = scmp.lt.s32.totalorder %s1909_s9, %s1909_s9 }
  0x4a   : > { %p1912_p6 = pnand %p1910_p13, %p2162_p8  ;;  %p1919_p7 = por %p1918_p4, %p1917_p1 }
  0x4c   : > { %p1913_p0 = pneg %p1912_p6 }
  0x4e   : > { %p1920_p9 = pnand %p1919_p7, %p1913_p0 }
  0x50   : > { %1923 = shalt.err (!%p1920_p9)
}
  0x51   : > { %1758 = dma.hbm_to_vmem [thread:$0]  (!%p2145_p5), %s2422_s2, 128, %s243_s8, [#allocation12]  }
  0x52   : > { %s1924_s13 = scalar_lea.hbm %s2423_s3, 6144 }
  0x53   : > { %p1925_p3 = scmp.ne.s32.totalorder %s2423_s3, %s1924_s13  ;;  %p1931_p11 = scmp.lt.u32.totalorder %s1924_s13, %s2423_s3 }
  0x55   : > { %p1927_p2 = pnand %p1925_p3, %p2162_p8 }
  0x57   : > { %p1928_p10 = pneg %p1927_p2 }
  0x59   : > { %p1933_p12 = pnand %p1931_p11, %p1928_p10 }
  0x5b   : > { %1936 = shalt.err (!%p1933_p12)
}
  0x5c   : > { %s1937_s7 = scalar_lea.vmem %s253_s11, 6144  ;;  %p1945_p1 = scmp.lt.s32.totalorder %s253_s11, %s253_s11 }
  0x5d   : > { %p1938_p13 = scmp.ne.s32.totalorder %s253_s11, %s1937_s7  ;;  %p1946_p4 = scmp.lt.s32.totalorder %s1937_s7, %s1937_s7 }
  0x5f   : > { %p1940_p6 = pnand %p1938_p13, %p2162_p8  ;;  %p1947_p7 = por %p1946_p4, %p1945_p1 }
  0x61   : > { %p1941_p0 = pneg %p1940_p6 }
  0x63   : > { %p1948_p9 = pnand %p1947_p7, %p1941_p0 }
  0x65   : > { %1951 = shalt.err (!%p1948_p9)
}
  0x66   : > { %1761 = dma.hbm_to_vmem [thread:$0]  (!%p2145_p5), %s2423_s3, 6144, %s253_s11, [#allocation15], %s2050_s19, %s2050_s19, %s2051_s20  }
  0x67   : > { %p2435_p3 = scmp.ne.s32.totalorder %s2431_s26, 0 }
  0x68   : > { %p2436_p8 = scmp.ne.s32.totalorder (!%p2435_p3), %s2430_s25, 0 }
  0x69   : > { %271 = sbr.rel (%p2435_p3) target bundleno = 1808 (0x710), region = 40 }
  0x70   : > { %2017 = dma.done.wait (%p2436_p8), [#allocation9], 256  }
  0x71   : > { %2019 = vsyncadd (%p2436_p8), [#allocation9], 4294967040 }
  0x72   : > { %2021 = dma.done.wait (%p2436_p8), [#allocation12], 6272  }
  0x73   : > { %2023 = vsyncadd (%p2436_p8), [#allocation12], 4294961024 }
  0x74   : > { %2025 = dma.done.wait (%p2436_p8), [#allocation15], 6144  }
  0x75   : > { %2027 = vsyncadd (%p2436_p8), [#allocation15], 4294961152  ;;  %v310_v0 = vlaneseq  ;;  %v2054_v1 = vmov 0.0   ;;  %p1239_p5 = scmp.ne.s32.totalorder %s2038_s21, 0 }
  0x76   : > { %308 = vst [vmem:[#allocation4] sm:$0x3] %v2054_v1  ;;  %309 = vst [vmem:[#allocation5] sm:$0x3] %v2054_v1  ;;  %v322_v4 = vld [vmem:[#allocation11] sm:$0xff] (!%p1239_p5)  ;;  %v323_v5 = vld [vmem:[#allocation11 + $0x8] sm:$0xff] (!%p1239_p5) }
  0x77   : > { %v2264_v2 = vshrl.u32 %v310_v0, 7  ;;  %320 = sbr.rel (%p1239_p5) target bundleno = 383 (0x17f), region = 64  ;;  %v324_v6 = vld [vmem:[#allocation11 + $0x10] sm:$0xff] (!%p1239_p5)  ;;  %v2055_v7 = vmov (!%p1239_p5), 0.0|0.0   ;;  %v1582_v8 = vpack.c.bf16 (!%p1239_p5), %v323_v5, %v322_v4  ;;  %v325_v9 = vld [vmem:[#allocation11 + $0x18] sm:$0xff] (!%p1239_p5)  ;;  %vm2056_vm1 = vmmov (!%p1239_p5), 0  }
  0x78   : > { %1581 = vmatprep.subr.bf16.mxu0 (!%p1239_p5), %v2055_v7  ;;  %v2057_v10 = vmov (!%p1239_p5), 0.0   ;;  %v1585_v11 = vpack.c.bf16 (!%p1239_p5), %v325_v9, %v324_v6  ;;  %v326_v12 = vld [vmem:[#allocation11 + $0x20] sm:$0xff] (!%p1239_p5)  ;;  %v327_v13 = vld [vmem:[#allocation11 + $0x28] sm:$0xff] (!%p1239_p5)  ;;  %v328_v15 = vld [vmem:[#allocation11 + $0x30] sm:$0xff] (!%p1239_p5) }
  0x79   : > { %vm314_vm0 = vcmp.lt.s32.totalorder %v2264_v2, 7  ;;  %1403 = vmatprep.mubr.msk.f32.mxu0 (!%p1239_p5), %vm2056_vm1, %v2057_v10  ;;  %1583 = vmatpush3.bf16.msra.mxu0 (!%p1239_p5), %v1582_v8  ;;  %v1588_v14 = vpack.c.bf16 (!%p1239_p5), %v327_v13, %v326_v12  ;;  %v329_v16 = vld [vmem:[#allocation11 + $0x38] sm:$0xff] (!%p1239_p5)  ;;  %v330_v18 = vld [vmem:[#allocation11 + $0x40] sm:$0xff] (!%p1239_p5)  ;;  %v331_v19 = vld [vmem:[#allocation11 + $0x48] sm:$0xff] (!%p1239_p5) }
  0x7a   : > { %v2267_v3 = vsel %vm314_vm0, 1.0, %v2054_v1  ;;  %1584 = vmatprep.subr.bf16.mxu0 (!%p1239_p5), %v2055_v7  ;;  %v1591_v17 = vpack.c.bf16 (!%p1239_p5), %v329_v16, %v328_v15  ;;  %v1594_v20 = vpack.c.bf16 (!%p1239_p5), %v331_v19, %v330_v18  ;;  %v332_v21 = vld [vmem:[#allocation11 + $0x50] sm:$0xff] (!%p1239_p5)  ;;  %v333_v22 = vld [vmem:[#allocation11 + $0x58] sm:$0xff] (!%p1239_p5)  ;;  %v334_v24 = vld [vmem:[#allocation11 + $0x60] sm:$0xff] (!%p1239_p5) }
  0x7b   : > { %v1597_v23 = vpack.c.bf16 (!%p1239_p5), %v333_v22, %v332_v21  ;;  %v335_v25 = vld [vmem:[#allocation11 + $0x68] sm:$0xff] (!%p1239_p5)  ;;  %v336_v27 = vld [vmem:[#allocation11 + $0x70] sm:$0xff] (!%p1239_p5)  ;;  %v337_v28 = vld [vmem:[#allocation11 + $0x78] sm:$0xff] (!%p1239_p5) }
  0x7c   : > { %v1600_v26 = vpack.c.bf16 (!%p1239_p5), %v335_v25, %v334_v24  ;;  %v1603_v29 = vpack.c.bf16 (!%p1239_p5), %v337_v28, %v336_v27  ;;  %v321_v30 = vld [vmem:[#allocation8] sm:$0xff] (!%p1239_p5) }
  0x7d   : > { %1586 = vmatpush3.bf16.msra.mxu0 (!%p1239_p5), %v1585_v11  ;;  %v409_v44 = vld [vmem:[#allocation4] sm:$0x1] (!%p1239_p5)  ;;  %v418_v47 = vld [vmem:[#allocation4 + $0x1] sm:$0x1] (!%p1239_p5) }
  0x7e   : > { %1587 = vmatprep.subr.bf16.mxu0 %v2055_v7 }
  0x81   : > { %1589 = vmatpush3.bf16.msra.mxu0 %v1588_v14 }
  0x82   : > { %1590 = vmatprep.subr.bf16.mxu0 %v2055_v7 }
  0x85   : > { %1592 = vmatpush3.bf16.msra.mxu0 %v1591_v17 }
  0x86   : > { %1593 = vmatprep.subr.bf16.mxu0 %v2055_v7 }
  0x89   : > { %1595 = vmatpush3.bf16.msra.mxu0 %v1594_v20 }
  0x8a   : > { %1596 = vmatprep.subr.bf16.mxu0 %v2055_v7 }
  0x8d   : > { %1598 = vmatpush3.bf16.msra.mxu0 %v1597_v23 }
  0x8e   : > { %1599 = vmatprep.subr.bf16.mxu0 %v2055_v7 }
  0x91   : > { %1601 = vmatpush3.bf16.msra.mxu0 %v1600_v26 }
  0x92   : > { %1602 = vmatprep.subr.bf16.mxu0 %v2055_v7 }
  0x95   : > { %1604 = vmatpush3.bf16.msra.mxu0 %v1603_v29 }
  0x98   : > { %1404 = vmatmul.mubr.f32.vlgmr.msra.gmra.mrb[0].mxu0 %v321_v30 }
 0x16b   : > { %v404_v31 = vpop.f32.mrb[0].mxu0 }
 0x16c   : > { %v408_v32 = vmul.f32 %v2267_v3, %v404_v31  ;;  %429 = vst [vmem:[#allocation2] sm:$0xff] %v404_v31  ;;  %v1405_v33 = vpop.f32.mrb[1].mxu0 }
 0x16e   : > { %v410_v34 = vrot.slane %v408_v32, 4  ;;  %v419_v35 = vmul.f32 %v408_v32, %v404_v31 }
 0x170   : > { %v411_v36 = vadd.f32 %v410_v34, %v408_v32  ;;  %v420_v37 = vrot.slane %v419_v35, 4 }
 0x172   : > { %v412_v38 = vrot.slane %v411_v36, 2  ;;  %v421_v39 = vadd.f32 %v420_v37, %v419_v35 }
 0x174   : > { %v413_v40 = vadd.f32 %v412_v38, %v411_v36  ;;  %v422_v41 = vrot.slane %v421_v39, 2 }
 0x176   : > { %v414_v42 = vrot.slane %v413_v40, 1  ;;  %v423_v43 = vadd.f32 %v422_v41, %v421_v39 }
 0x178   : > { %v415_v45 = vadd.f32 %v414_v42, %v413_v40  ;;  %v424_v46 = vrot.slane %v423_v43, 1 }
 0x17a   : > { %v416_v48 = vadd.f32 %v415_v45, %v409_v44  ;;  %v425_v49 = vadd.f32 %v424_v46, %v423_v43 }
 0x17c   : > { %417 = vst [vmem:[#allocation4] sm:$0x1] %v416_v48  ;;  %v426_v50 = vadd.f32 %v425_v49, %v418_v47 }
 0x17e   : > { %427 = vst [vmem:[#allocation4 + $0x1] sm:$0x1] %v426_v50 }
 0x17f PF: > { %p430_p2 = scmp.ge.s32.totalorder %s2038_s21, 1  ;;  %p431_p10 = scmp.lt.s32.totalorder %s2038_s21, 2 }
 0x181   : > { %p2277_p11 = pnand %p431_p10, %p430_p2 }
 0x182   : > { %s1242_s26 = sshll.u32 (!%p2277_p11), %s2038_s21, 7  ;;  %v2058_v51 = vmov (!%p2277_p11), 0.0|0.0   ;;  %vm2059_vm2 = vmmov (!%p2277_p11), 0   ;;  %v2060_v52 = vmov (!%p2277_p11), 0.0   ;;  %v437_v0 = vld [vmem:[#allocation2] sm:$0xff] (!%p2277_p11) }
 0x183   : > { %435 = sbr.rel (%p2277_p11) target bundleno = 653 (0x28d), region = 68  ;;  %1605 = vmatprep.subr.bf16.mxu0 (!%p2277_p11), %v2058_v51  ;;  %1438 = vmatprep.mubr.msk.f32.mxu0 (!%p2277_p11), %vm2059_vm2, %v2060_v52  ;;  %s2284_s29 = scalar_lea.vmem (!%p2277_p11), [#allocation11], %s1242_s26  ;;  %v1240_v1 = vld [vmem:[#allocation6] ss:$0 sm:$0xff] (!%p2277_p11)  ;;  %v1241_v8 = vld [vmem:[#allocation6 + $0x1] ss:$0 sm:$0xff] (!%p2277_p11) }
 0x184   : > { %v453_v53 = vld [vmem:[%s2284_s29] sm:$0xff] (!%p2277_p11)  ;;  %v454_v54 = vld [vmem:[%s2284_s29 + $0x8] sm:$0xff] (!%p2277_p11)  ;;  %v455_v55 = vld [vmem:[%s2284_s29 + $0x10] sm:$0xff] (!%p2277_p11)  ;;  %v443_v7 = vmul.f32 (!%p2277_p11), %v1240_v1, %v437_v0 }
 0x185   : > { %v1606_v56 = vpack.c.bf16 (!%p2277_p11), %v454_v54, %v453_v53  ;;  %v456_v57 = vld [vmem:[%s2284_s29 + $0x18] sm:$0xff] (!%p2277_p11)  ;;  %v457_v59 = vld [vmem:[%s2284_s29 + $0x20] sm:$0xff] (!%p2277_p11)  ;;  %v458_v60 = vld [vmem:[%s2284_s29 + $0x28] sm:$0xff] (!%p2277_p11) }
 0x186   : > { %v1609_v58 = vpack.c.bf16 (!%p2277_p11), %v456_v57, %v455_v55  ;;  %v1612_v61 = vpack.c.bf16 (!%p2277_p11), %v458_v60, %v457_v59  ;;  %v459_v62 = vld [vmem:[%s2284_s29 + $0x30] sm:$0xff] (!%p2277_p11)  ;;  %v460_v63 = vld [vmem:[%s2284_s29 + $0x38] sm:$0xff] (!%p2277_p11)  ;;  %v461_v5 = vld [vmem:[%s2284_s29 + $0x40] sm:$0xff] (!%p2277_p11)  ;;  %v449_v12 = vadd.f32 (!%p2277_p11), %v1241_v8, %v443_v7 }
 0x187   : > { %1607 = vmatpush3.bf16.msra.mxu0 (!%p2277_p11), %v1606_v56  ;;  %v1615_v4 = vpack.c.bf16 (!%p2277_p11), %v460_v63, %v459_v62  ;;  %v462_v6 = vld [vmem:[%s2284_s29 + $0x48] sm:$0xff] (!%p2277_p11)  ;;  %v463_v10 = vld [vmem:[%s2284_s29 + $0x50] sm:$0xff] (!%p2277_p11)  ;;  %v464_v11 = vld [vmem:[%s2284_s29 + $0x58] sm:$0xff] (!%p2277_p11) }
 0x188   : > { %1608 = vmatprep.subr.bf16.mxu0 (!%p2277_p11), %v2058_v51  ;;  %v1618_v9 = vpack.c.bf16 (!%p2277_p11), %v462_v6, %v461_v5  ;;  %v1621_v13 = vpack.c.bf16 (!%p2277_p11), %v464_v11, %v463_v10  ;;  %v465_v14 = vld [vmem:[%s2284_s29 + $0x60] sm:$0xff] (!%p2277_p11)  ;;  %v466_v15 = vld [vmem:[%s2284_s29 + $0x68] sm:$0xff] (!%p2277_p11)  ;;  %1826 = vtanh.f32 (!%p2277_p11), %v449_v12  ;;  %v467_v17 = vld [vmem:[%s2284_s29 + $0x70] sm:$0xff] (!%p2277_p11) }
 0x189   : > { %v1624_v16 = vpack.c.bf16 (!%p2277_p11), %v466_v15, %v465_v14  ;;  %v468_v18 = vld [vmem:[%s2284_s29 + $0x78] sm:$0xff] (!%p2277_p11)  ;;  %v540_v34 = vld [vmem:[#allocation4] sm:$0x1] (!%p2277_p11)  ;;  %v549_v37 = vld [vmem:[#allocation4 + $0x1] sm:$0x1] (!%p2277_p11) }
 0x18a   : > { %v1627_v19 = vpack.c.bf16 %v468_v18, %v467_v17 }
 0x18b   : > { %1610 = vmatpush3.bf16.msra.mxu0 %v1609_v58 }
 0x18c   : > { %1611 = vmatprep.subr.bf16.mxu0 %v2058_v51 }
 0x18f   : > { %1613 = vmatpush3.bf16.msra.mxu0 %v1612_v61 }
 0x190   : > { %1614 = vmatprep.subr.bf16.mxu0 %v2058_v51 }
 0x192   : > { %v1827_v20 = vpop.eup %1826 }
 0x193   : > { %1616 = vmatpush3.bf16.msra.mxu0 %v1615_v4 }
 0x194   : > { %1617 = vmatprep.subr.bf16.mxu0 %v2058_v51 }
 0x197   : > { %1619 = vmatpush3.bf16.msra.mxu0 %v1618_v9 }
 0x198   : > { %1620 = vmatprep.subr.bf16.mxu0 %v2058_v51 }
 0x19b   : > { %1622 = vmatpush3.bf16.msra.mxu0 %v1621_v13 }
 0x19c   : > { %1623 = vmatprep.subr.bf16.mxu0 %v2058_v51 }
 0x19f   : > { %1625 = vmatpush3.bf16.msra.mxu0 %v1624_v16 }
 0x1a0   : > { %1626 = vmatprep.subr.bf16.mxu0 %v2058_v51 }
 0x1a3   : > { %1628 = vmatpush3.bf16.msra.mxu0 %v1627_v19 }
 0x1a6   : > { %1439 = vmatmul.mubr.f32.vlgmr.msra.gmra.mrb[0].mxu0 %v1827_v20 }
 0x279   : > { %v535_v21 = vpop.f32.mrb[0].mxu0 }
 0x27a   : > { %v539_v22 = vmul.f32 %v2267_v3, %v535_v21  ;;  %559 = vst [vmem:[#allocation2] sm:$0xff] %v535_v21  ;;  %v1440_v23 = vpop.f32.mrb[1].mxu0 }
 0x27c   : > { %v541_v24 = vrot.slane %v539_v22, 4  ;;  %v550_v25 = vmul.f32 %v539_v22, %v535_v21 }
 0x27e   : > { %v542_v26 = vadd.f32 %v541_v24, %v539_v22  ;;  %v551_v27 = vrot.slane %v550_v25, 4 }
 0x280   : > { %v543_v28 = vrot.slane %v542_v26, 2  ;;  %v552_v29 = vadd.f32 %v551_v27, %v550_v25 }
 0x282   : > { %v544_v30 = vadd.f32 %v543_v28, %v542_v26  ;;  %v553_v31 = vrot.slane %v552_v29, 2 }
 0x284   : > { %v545_v32 = vrot.slane %v544_v30, 1  ;;  %v554_v33 = vadd.f32 %v553_v31, %v552_v29 }
 0x286   : > { %v546_v35 = vadd.f32 %v545_v32, %v544_v30  ;;  %v555_v36 = vrot.slane %v554_v33, 1 }
 0x288   : > { %v547_v38 = vadd.f32 %v546_v35, %v540_v34  ;;  %v556_v39 = vadd.f32 %v555_v36, %v554_v33 }
 0x28a   : > { %548 = vst [vmem:[#allocation4] sm:$0x1] %v547_v38  ;;  %v557_v3 = vadd.f32 %v556_v39, %v549_v37 }
 0x28c   : > { %558 = vst [vmem:[#allocation4 + $0x1] sm:$0x1] %v557_v3 }
 0x28d PF: > { %p560_p12 = scmp.ge.s32.totalorder %s2038_s21, 0 }
 0x28f   : > { %p2306_p13 = pnand %p560_p12, %p431_p10 }
 0x290   : > { %s1244_s19 = sshll.u32 (!%p2306_p13), %s2038_s21, 1 }
 0x291   : > { %566 = sbr.rel (%p2306_p13) target bundleno = 686 (0x2ae), region = 72  ;;  %v567_v40 = vld [vmem:[#allocation4] sm:$0x1] (!%p2306_p13)  ;;  %s575_s20 = scalar_lea.vmem (!%p2306_p13), [#allocation13], %s1244_s19 }
 0x292   : > { %v568_v42 = vmul.f32 (!%p2306_p13), 0.14285715, %v567_v40  ;;  %v576_v48 = vld [vmem:[%s575_s20] sm:$0x1] (!%p2306_p13)  ;;  %v1246_v51 = vld [vmem:[%s575_s20 + $0x1] sm:$0x1] (!%p2306_p13) }
 0x293   : > { %v569_v41 = vld [vmem:[#allocation4 + $0x1] sm:$0x1] (!%p2306_p13) }
 0x294   : > { %v570_v43 = vmul.f32 (!%p2306_p13), 0.14285715, %v569_v41  ;;  %v571_v44 = vmul.f32 (!%p2306_p13), %v568_v42, %v568_v42 }
 0x296   : > { %v572_v45 = vsub.f32 (!%p2306_p13), %v570_v43, %v571_v44 }
 0x298   : > { %v573_v46 = vmax.f32 %v572_v45, 0.0 }
 0x29a   : > { %v580_v47 = vadd.f32 1e-05, %v573_v46 }
 0x29c   : > { %1828 = vrsqrt.f32 %v580_v47 }
 0x2a6   : > { %v1829_v49 = vpop.eup %1828 }
 0x2a7   : > { %v582_v50 = vmul.f32 %v1829_v49, %v576_v48 }
 0x2a9   : > { %583 = vst [vmem:[#allocation6] sm:$0x1] %v582_v50  ;;  %v584_v52 = vmul.f32 %v582_v50, %v568_v42 }
 0x2ab   : > { %v585_v53 = vsub.f32 %v1246_v51, %v584_v52 }
 0x2ad   : > { %586 = vst [vmem:[#allocation6 + $0x1] sm:$0x1] %v585_v53 }
 0x2ae PF: > { %p1247_p6 = scmp.ne.s32.totalorder %s2038_s21, 2 }
 0x2af   : > { %v607_v54 = vld [vmem:[#allocation11 + $0x100] sm:$0xff] (!%p1247_p6)  ;;  %v608_v55 = vld [vmem:[#allocation11 + $0x108] sm:$0xff] (!%p1247_p6)  ;;  %v609_v56 = vld [vmem:[#allocation11 + $0x110] sm:$0xff] (!%p1247_p6)  ;;  %v2061_v57 = vmov (!%p1247_p6), 0.0|0.0   ;;  %vm2062_vm3 = vmmov (!%p1247_p6), 0   ;;  %v2063_v60 = vmov (!%p1247_p6), 0.0  }
 0x2b0   : > { %590 = sbr.rel (%p1247_p6) target bundleno = 936 (0x3a8), region = 76  ;;  %1629 = vmatprep.subr.bf16.mxu0 (!%p1247_p6), %v2061_v57  ;;  %v1630_v58 = vpack.c.bf16 (!%p1247_p6), %v608_v55, %v607_v54  ;;  %v610_v59 = vld [vmem:[#allocation11 + $0x118] sm:$0xff] (!%p1247_p6)  ;;  %1473 = vmatprep.mubr.msk.f32.mxu0 (!%p1247_p6), %vm2062_vm3, %v2063_v60  ;;  %v611_v62 = vld [vmem:[#allocation11 + $0x120] sm:$0xff] (!%p1247_p6)  ;;  %v612_v63 = vld [vmem:[#allocation11 + $0x128] sm:$0xff] (!%p1247_p6) }
 0x2b1   : > { %v1633_v61 = vpack.c.bf16 (!%p1247_p6), %v610_v59, %v609_v56  ;;  %v1636_v0 = vpack.c.bf16 (!%p1247_p6), %v612_v63, %v611_v62  ;;  %v613_v1 = vld [vmem:[#allocation11 + $0x130] sm:$0xff] (!%p1247_p6)  ;;  %v614_v4 = vld [vmem:[#allocation11 + $0x138] sm:$0xff] (!%p1247_p6)  ;;  %v1248_v6 = vld [vmem:[#allocation6] ss:$0 sm:$0xff] (!%p1247_p6) }
 0x2b2   : > { %1631 = vmatpush3.bf16.msra.mxu0 (!%p1247_p6), %v1630_v58  ;;  %v592_v5 = vld [vmem:[#allocation2] sm:$0xff] (!%p1247_p6)  ;;  %v1639_v7 = vpack.c.bf16 (!%p1247_p6), %v614_v4, %v613_v1  ;;  %v615_v8 = vld [vmem:[#allocation11 + $0x140] sm:$0xff] (!%p1247_p6)  ;;  %v616_v9 = vld [vmem:[#allocation11 + $0x148] sm:$0xff] (!%p1247_p6) }
 0x2b3   : > { %1632 = vmatprep.subr.bf16.mxu0 (!%p1247_p6), %v2061_v57  ;;  %v598_v10 = vmul.f32 (!%p1247_p6), %v1248_v6, %v592_v5  ;;  %v1642_v12 = vpack.c.bf16 (!%p1247_p6), %v616_v9, %v615_v8  ;;  %v617_v13 = vld [vmem:[#allocation11 + $0x150] sm:$0xff] (!%p1247_p6)  ;;  %v618_v14 = vld [vmem:[#allocation11 + $0x158] sm:$0xff] (!%p1247_p6)  ;;  %v619_v17 = vld [vmem:[#allocation11 + $0x160] sm:$0xff] (!%p1247_p6) }
 0x2b4   : > { %v1249_v11 = vld [vmem:[#allocation6 + $0x1] ss:$0 sm:$0xff] (!%p1247_p6)  ;;  %v1645_v16 = vpack.c.bf16 (!%p1247_p6), %v618_v14, %v617_v13  ;;  %v621_v20 = vld [vmem:[#allocation11 + $0x170] sm:$0xff] (!%p1247_p6)  ;;  %v622_v21 = vld [vmem:[#allocation11 + $0x178] sm:$0xff] (!%p1247_p6) }
 0x2b5   : > { %v604_v15 = vadd.f32 (!%p1247_p6), %v1249_v11, %v598_v10  ;;  %v620_v18 = vld [vmem:[#allocation11 + $0x168] sm:$0xff] (!%p1247_p6)  ;;  %v1651_v22 = vpack.c.bf16 (!%p1247_p6), %v622_v21, %v621_v20  ;;  %v1250_v24 = vld [vmem:[#allocation13 + $0x4] ss:$0 sm:$0xff] (!%p1247_p6) }
 0x2b6   : > { %1634 = vmatpush3.bf16.msra.mxu0 (!%p1247_p6), %v1633_v61  ;;  %v1648_v19 = vpack.c.bf16 (!%p1247_p6), %v620_v18, %v619_v17 }
 0x2b7   : > { %1635 = vmatprep.subr.bf16.mxu0 %v2061_v57  ;;  %1830 = vtanh.f32 %v604_v15 }
 0x2ba   : > { %1637 = vmatpush3.bf16.msra.mxu0 %v1636_v0 }
 0x2bb   : > { %1638 = vmatprep.subr.bf16.mxu0 %v2061_v57 }
 0x2be   : > { %1640 = vmatpush3.bf16.msra.mxu0 %v1639_v7 }
 0x2bf   : > { %1641 = vmatprep.subr.bf16.mxu0 %v2061_v57 }
 0x2c1   : > { %v1831_v23 = vpop.eup %1830 }
 0x2c2   : > { %1643 = vmatpush3.bf16.msra.mxu0 %v1642_v12 }
 0x2c3   : > { %1644 = vmatprep.subr.bf16.mxu0 %v2061_v57 }
 0x2c6   : > { %1646 = vmatpush3.bf16.msra.mxu0 %v1645_v16 }
 0x2c7   : > { %1647 = vmatprep.subr.bf16.mxu0 %v2061_v57 }
 0x2ca   : > { %1649 = vmatpush3.bf16.msra.mxu0 %v1648_v19 }
 0x2cb   : > { %1650 = vmatprep.subr.bf16.mxu0 %v2061_v57 }
 0x2ce   : > { %1652 = vmatpush3.bf16.msra.mxu0 %v1651_v22 }
 0x2d1   : > { %1474 = vmatmul.mubr.f32.vlgmr.msra.gmra.mrb[0].mxu0 %v1831_v23 }
 0x3a4   : > { %v694_v25 = vpop.f32.mrb[0].mxu0 }
 0x3a5   : > { %v695_v26 = vadd.f32 %v1250_v24, %v694_v25  ;;  %v1475_v27 = vpop.f32.mrb[1].mxu0 }
 0x3a7   : > { %698 = vst [vmem:[#allocation16] sm:$0xff] %v695_v26 }
 0x3a8 PF: > { %704 = sbr.rel (%p1239_p5) target bundleno = 1199 (0x4af), region = 80  ;;  %v707_v28 = vld [vmem:[#allocation14] sm:$0xff] (!%p1239_p5)  ;;  %v708_v29 = vld [vmem:[#allocation14 + $0x8] sm:$0xff] (!%p1239_p5)  ;;  %v709_v30 = vld [vmem:[#allocation14 + $0x10] sm:$0xff] (!%p1239_p5)  ;;  %v2064_v31 = vmov (!%p1239_p5), 0.0|0.0   ;;  %vm2065_vm4 = vmmov (!%p1239_p5), 0  }
 0x3a9   : > { %1653 = vmatprep.subr.bf16.mxu0 (!%p1239_p5), %v2064_v31  ;;  %v1654_v32 = vpack.c.bf16 (!%p1239_p5), %v708_v29, %v707_v28  ;;  %v710_v33 = vld [vmem:[#allocation14 + $0x18] sm:$0xff] (!%p1239_p5)  ;;  %v2066_v34 = vmov (!%p1239_p5), 0.0   ;;  %v711_v36 = vld [vmem:[#allocation14 + $0x20] sm:$0xff] (!%p1239_p5)  ;;  %v712_v37 = vld [vmem:[#allocation14 + $0x28] sm:$0xff] (!%p1239_p5) }
 0x3aa   : > { %1508 = vmatprep.mubr.msk.f32.mxu0 (!%p1239_p5), %vm2065_vm4, %v2066_v34  ;;  %v1657_v35 = vpack.c.bf16 (!%p1239_p5), %v710_v33, %v709_v30  ;;  %v1660_v38 = vpack.c.bf16 (!%p1239_p5), %v712_v37, %v711_v36  ;;  %v713_v39 = vld [vmem:[#allocation14 + $0x30] sm:$0xff] (!%p1239_p5)  ;;  %v714_v3 = vld [vmem:[#allocation14 + $0x38] sm:$0xff] (!%p1239_p5)  ;;  %v715_v41 = vld [vmem:[#allocation14 + $0x40] sm:$0xff] (!%p1239_p5) }
 0x3ab   : > { %1655 = vmatpush3.bf16.msra.mxu0 (!%p1239_p5), %v1654_v32  ;;  %v1663_v40 = vpack.c.bf16 (!%p1239_p5), %v714_v3, %v713_v39  ;;  %v716_v42 = vld [vmem:[#allocation14 + $0x48] sm:$0xff] (!%p1239_p5)  ;;  %v717_v44 = vld [vmem:[#allocation14 + $0x50] sm:$0xff] (!%p1239_p5)  ;;  %v718_v45 = vld [vmem:[#allocation14 + $0x58] sm:$0xff] (!%p1239_p5) }
 0x3ac   : > { %1656 = vmatprep.subr.bf16.mxu0 (!%p1239_p5), %v2064_v31  ;;  %v1666_v43 = vpack.c.bf16 (!%p1239_p5), %v716_v42, %v715_v41  ;;  %v1669_v46 = vpack.c.bf16 (!%p1239_p5), %v718_v45, %v717_v44  ;;  %v719_v47 = vld [vmem:[#allocation14 + $0x60] sm:$0xff] (!%p1239_p5)  ;;  %v720_v48 = vld [vmem:[#allocation14 + $0x68] sm:$0xff] (!%p1239_p5)  ;;  %v721_v50 = vld [vmem:[#allocation14 + $0x70] sm:$0xff] (!%p1239_p5) }
 0x3ad   : > { %v1672_v49 = vpack.c.bf16 (!%p1239_p5), %v720_v48, %v719_v47  ;;  %v722_v51 = vld [vmem:[#allocation14 + $0x78] sm:$0xff] (!%p1239_p5)  ;;  %v706_v53 = vld [vmem:[#allocation8 + $0x8] sm:$0xff] (!%p1239_p5)  ;;  %v794_v4 = vld [vmem:[#allocation5] sm:$0x1] (!%p1239_p5) }
 0x3ae   : > { %v1675_v52 = vpack.c.bf16 (!%p1239_p5), %v722_v51, %v721_v50  ;;  %v803_v7 = vld [vmem:[#allocation5 + $0x1] sm:$0x1] (!%p1239_p5) }
 0x3af   : > { %1658 = vmatpush3.bf16.msra.mxu0 %v1657_v35 }
 0x3b0   : > { %1659 = vmatprep.subr.bf16.mxu0 %v2064_v31 }
 0x3b3   : > { %1661 = vmatpush3.bf16.msra.mxu0 %v1660_v38 }
 0x3b4   : > { %1662 = vmatprep.subr.bf16.mxu0 %v2064_v31 }
 0x3b7   : > { %1664 = vmatpush3.bf16.msra.mxu0 %v1663_v40 }
 0x3b8   : > { %1665 = vmatprep.subr.bf16.mxu0 %v2064_v31 }
 0x3bb   : > { %1667 = vmatpush3.bf16.msra.mxu0 %v1666_v43 }
 0x3bc   : > { %1668 = vmatprep.subr.bf16.mxu0 %v2064_v31 }
 0x3bf   : > { %1670 = vmatpush3.bf16.msra.mxu0 %v1669_v46 }
 0x3c0   : > { %1671 = vmatprep.subr.bf16.mxu0 %v2064_v31 }
 0x3c3   : > { %1673 = vmatpush3.bf16.msra.mxu0 %v1672_v49 }
 0x3c4   : > { %1674 = vmatprep.subr.bf16.mxu0 %v2064_v31 }
 0x3c7   : > { %1676 = vmatpush3.bf16.msra.mxu0 %v1675_v52 }
 0x3ca   : > { %1509 = vmatmul.mubr.f32.vlgmr.msra.gmra.mrb[0].mxu0 %v706_v53 }
 0x49d   : > { %v789_v54 = vpop.f32.mrb[0].mxu0 }
 0x49e   : > { %v795_v55 = vrot.slane %v789_v54, 4  ;;  %v804_v56 = vmul.f32 %v789_v54, %v789_v54  ;;  %814 = vst [vmem:[#allocation3] sm:$0xff] %v789_v54  ;;  %v1510_v57 = vpop.f32.mrb[1].mxu0 }
 0x4a0   : > { %v796_v58 = vadd.f32 %v795_v55, %v789_v54  ;;  %v805_v59 = vrot.slane %v804_v56, 4 }
 0x4a2   : > { %v797_v60 = vrot.slane %v796_v58, 2  ;;  %v806_v61 = vadd.f32 %v805_v59, %v804_v56 }
 0x4a4   : > { %v798_v62 = vadd.f32 %v797_v60, %v796_v58  ;;  %v807_v63 = vrot.slane %v806_v61, 2 }
 0x4a6   : > { %v799_v0 = vrot.slane %v798_v62, 1  ;;  %v808_v1 = vadd.f32 %v807_v63, %v806_v61 }
 0x4a8   : > { %v800_v5 = vadd.f32 %v799_v0, %v798_v62  ;;  %v809_v6 = vrot.slane %v808_v1, 1 }
 0x4aa   : > { %v801_v8 = vadd.f32 %v800_v5, %v794_v4  ;;  %v810_v9 = vadd.f32 %v809_v6, %v808_v1 }
 0x4ac   : > { %802 = vst [vmem:[#allocation5] sm:$0x1] %v801_v8  ;;  %v811_v10 = vadd.f32 %v810_v9, %v803_v7 }
 0x4ae   : > { %812 = vst [vmem:[#allocation5 + $0x1] sm:$0x1] %v811_v10 }
 0x4af PF: > { %816 = sbr.rel (%p2277_p11) target bundleno = 1464 (0x5b8), region = 84  ;;  %s1254_s11 = sshll.u32 (!%p2277_p11), %s2038_s21, 7  ;;  %v2067_v11 = vmov (!%p2277_p11), 0.0|0.0   ;;  %vm2068_vm5 = vmmov (!%p2277_p11), 0   ;;  %v2069_v12 = vmov (!%p2277_p11), 0.0   ;;  %v818_v24 = vld [vmem:[#allocation3] sm:$0xff] (!%p2277_p11) }
 0x4b0   : > { %1677 = vmatprep.subr.bf16.mxu0 (!%p2277_p11), %v2067_v11  ;;  %1543 = vmatprep.mubr.msk.f32.mxu0 (!%p2277_p11), %vm2068_vm5, %v2069_v12  ;;  %s2321_s18 = scalar_lea.vmem (!%p2277_p11), [#allocation14], %s1254_s11  ;;  %v1252_v25 = vld [vmem:[#allocation7] ss:$0 sm:$0xff] (!%p2277_p11)  ;;  %v1253_v30 = vld [vmem:[#allocation7 + $0x1] ss:$0 sm:$0xff] (!%p2277_p11) }
 0x4b1   : > { %v834_v13 = vld [vmem:[%s2321_s18] sm:$0xff] (!%p2277_p11)  ;;  %v835_v14 = vld [vmem:[%s2321_s18 + $0x8] sm:$0xff] (!%p2277_p11)  ;;  %v836_v15 = vld [vmem:[%s2321_s18 + $0x10] sm:$0xff] (!%p2277_p11)  ;;  %v824_v29 = vmul.f32 (!%p2277_p11), %v1252_v25, %v818_v24 }
 0x4b2   : > { %v1678_v16 = vpack.c.bf16 (!%p2277_p11), %v835_v14, %v834_v13  ;;  %v837_v17 = vld [vmem:[%s2321_s18 + $0x18] sm:$0xff] (!%p2277_p11)  ;;  %v838_v19 = vld [vmem:[%s2321_s18 + $0x20] sm:$0xff] (!%p2277_p11)  ;;  %v839_v20 = vld [vmem:[%s2321_s18 + $0x28] sm:$0xff] (!%p2277_p11) }
 0x4b3   : > { %v1681_v18 = vpack.c.bf16 (!%p2277_p11), %v837_v17, %v836_v15  ;;  %v1684_v21 = vpack.c.bf16 (!%p2277_p11), %v839_v20, %v838_v19  ;;  %v840_v22 = vld [vmem:[%s2321_s18 + $0x30] sm:$0xff] (!%p2277_p11)  ;;  %v841_v23 = vld [vmem:[%s2321_s18 + $0x38] sm:$0xff] (!%p2277_p11)  ;;  %v842_v27 = vld [vmem:[%s2321_s18 + $0x40] sm:$0xff] (!%p2277_p11)  ;;  %v830_v34 = vadd.f32 (!%p2277_p11), %v1253_v30, %v824_v29 }
 0x4b4   : > { %1679 = vmatpush3.bf16.msra.mxu0 (!%p2277_p11), %v1678_v16  ;;  %v1687_v26 = vpack.c.bf16 (!%p2277_p11), %v841_v23, %v840_v22  ;;  %v843_v28 = vld [vmem:[%s2321_s18 + $0x48] sm:$0xff] (!%p2277_p11)  ;;  %v844_v32 = vld [vmem:[%s2321_s18 + $0x50] sm:$0xff] (!%p2277_p11)  ;;  %v845_v33 = vld [vmem:[%s2321_s18 + $0x58] sm:$0xff] (!%p2277_p11) }
 0x4b5   : > { %1680 = vmatprep.subr.bf16.mxu0 (!%p2277_p11), %v2067_v11  ;;  %v1690_v31 = vpack.c.bf16 (!%p2277_p11), %v843_v28, %v842_v27  ;;  %v1693_v35 = vpack.c.bf16 (!%p2277_p11), %v845_v33, %v844_v32  ;;  %v846_v36 = vld [vmem:[%s2321_s18 + $0x60] sm:$0xff] (!%p2277_p11)  ;;  %v847_v37 = vld [vmem:[%s2321_s18 + $0x68] sm:$0xff] (!%p2277_p11)  ;;  %1832 = vtanh.f32 (!%p2277_p11), %v830_v34  ;;  %v848_v39 = vld [vmem:[%s2321_s18 + $0x70] sm:$0xff] (!%p2277_p11) }
 0x4b6   : > { %v1696_v38 = vpack.c.bf16 %v847_v37, %v846_v36  ;;  %v849_v3 = vld [vmem:[%s2321_s18 + $0x78] sm:$0xff]  ;;  %v921_v54 = vld [vmem:[#allocation5] sm:$0x1]  ;;  %v930_v57 = vld [vmem:[#allocation5 + $0x1] sm:$0x1] }
 0x4b7   : > { %v1699_v40 = vpack.c.bf16 %v849_v3, %v848_v39 }
 0x4b8   : > { %1682 = vmatpush3.bf16.msra.mxu0 %v1681_v18 }
 0x4b9   : > { %1683 = vmatprep.subr.bf16.mxu0 %v2067_v11 }
 0x4bc   : > { %1685 = vmatpush3.bf16.msra.mxu0 %v1684_v21 }
 0x4bd   : > { %1686 = vmatprep.subr.bf16.mxu0 %v2067_v11 }
 0x4bf   : > { %v1833_v41 = vpop.eup %1832 }
 0x4c0   : > { %1688 = vmatpush3.bf16.msra.mxu0 %v1687_v26 }
 0x4c1   : > { %1689 = vmatprep.subr.bf16.mxu0 %v2067_v11 }
 0x4c4   : > { %1691 = vmatpush3.bf16.msra.mxu0 %v1690_v31 }
 0x4c5   : > { %1692 = vmatprep.subr.bf16.mxu0 %v2067_v11 }
 0x4c8   : > { %1694 = vmatpush3.bf16.msra.mxu0 %v1693_v35 }
 0x4c9   : > { %1695 = vmatprep.subr.bf16.mxu0 %v2067_v11 }
 0x4cc   : > { %1697 = vmatpush3.bf16.msra.mxu0 %v1696_v38 }
 0x4cd   : > { %1698 = vmatprep.subr.bf16.mxu0 %v2067_v11 }
 0x4d0   : > { %1700 = vmatpush3.bf16.msra.mxu0 %v1699_v40 }
 0x4d3   : > { %1544 = vmatmul.mubr.f32.vlgmr.msra.gmra.mrb[0].mxu0 %v1833_v41 }
 0x5a6   : > { %v916_v42 = vpop.f32.mrb[0].mxu0 }
 0x5a7   : > { %v922_v43 = vrot.slane %v916_v42, 4  ;;  %v931_v44 = vmul.f32 %v916_v42, %v916_v42  ;;  %940 = vst [vmem:[#allocation3] sm:$0xff] %v916_v42  ;;  %v1545_v45 = vpop.f32.mrb[1].mxu0 }
 0x5a9   : > { %v923_v46 = vadd.f32 %v922_v43, %v916_v42  ;;  %v932_v47 = vrot.slane %v931_v44, 4 }
 0x5ab   : > { %v924_v48 = vrot.slane %v923_v46, 2  ;;  %v933_v49 = vadd.f32 %v932_v47, %v931_v44 }
 0x5ad   : > { %v925_v50 = vadd.f32 %v924_v48, %v923_v46  ;;  %v934_v51 = vrot.slane %v933_v49, 2 }
 0x5af   : > { %v926_v52 = vrot.slane %v925_v50, 1  ;;  %v935_v53 = vadd.f32 %v934_v51, %v933_v49 }
 0x5b1   : > { %v927_v55 = vadd.f32 %v926_v52, %v925_v50  ;;  %v936_v56 = vrot.slane %v935_v53, 1 }
 0x5b3   : > { %v928_v58 = vadd.f32 %v927_v55, %v921_v54  ;;  %v937_v59 = vadd.f32 %v936_v56, %v935_v53 }
 0x5b5   : > { %929 = vst [vmem:[#allocation5] sm:$0x1] %v928_v58  ;;  %v938_v60 = vadd.f32 %v937_v59, %v930_v57 }
 0x5b7   : > { %939 = vst [vmem:[#allocation5 + $0x1] sm:$0x1] %v938_v60 }
 0x5b8 PF: > { %942 = sbr.rel (%p2306_p13) target bundleno = 1497 (0x5d9), region = 88  ;;  %s1255_s27 = sshll.u32 (!%p2306_p13), %s2038_s21, 1 }
 0x5b9   : > { %s951_s13 = scalar_lea.vmem (!%p2306_p13), %s2424_s4, %s1255_s27 }
 0x5ba   : > { %v952_v7 = vld [vmem:[%s951_s13] sm:$0x1] (!%p2306_p13)  ;;  %v1257_v10 = vld [vmem:[%s951_s13 + $0x1] sm:$0x1] (!%p2306_p13) }
 0x5bc   : > { %v943_v61 = vld [vmem:[#allocation5] sm:$0x1] (!%p2306_p13) }
 0x5bd   : > { %v944_v63 = vmul.f32 (!%p2306_p13), 0.125, %v943_v61 }
 0x5be   : > { %v945_v62 = vld [vmem:[#allocation5 + $0x1] sm:$0x1] (!%p2306_p13) }
 0x5bf   : > { %v946_v0 = vmul.f32 0.125, %v945_v62  ;;  %v947_v1 = vmul.f32 %v944_v63, %v944_v63 }
 0x5c1   : > { %v948_v4 = vsub.f32 %v946_v0, %v947_v1 }
 0x5c3   : > { %v949_v5 = vmax.f32 %v948_v4, 0.0 }
 0x5c5   : > { %v956_v6 = vadd.f32 1e-05, %v949_v5 }
 0x5c7   : > { %1834 = vrsqrt.f32 %v956_v6 }
 0x5d1   : > { %v1835_v8 = vpop.eup %1834 }
 0x5d2   : > { %v958_v9 = vmul.f32 %v1835_v8, %v952_v7 }
 0x5d4   : > { %959 = vst [vmem:[#allocation7] sm:$0x1] %v958_v9  ;;  %v960_v11 = vmul.f32 %v958_v9, %v944_v63 }
 0x5d6   : > { %v961_v12 = vsub.f32 %v1257_v10, %v960_v11 }
 0x5d8   : > { %962 = vst [vmem:[#allocation7 + $0x1] sm:$0x1] %v961_v12 }
 0x5d9 PF: > { %965 = sbr.rel (%p1247_p6) target bundleno = 1760 (0x6e0), region = 92  ;;  %v982_v13 = vld [vmem:[#allocation14 + $0x100] sm:$0xff] (!%p1247_p6)  ;;  %v983_v14 = vld [vmem:[#allocation14 + $0x108] sm:$0xff] (!%p1247_p6)  ;;  %v984_v15 = vld [vmem:[#allocation14 + $0x110] sm:$0xff] (!%p1247_p6)  ;;  %v2070_v16 = vmov (!%p1247_p6), 0.0|0.0   ;;  %vm2071_vm6 = vmmov (!%p1247_p6), 0  }
 0x5da   : > { %1701 = vmatprep.subr.bf16.mxu0 (!%p1247_p6), %v2070_v16  ;;  %v1702_v17 = vpack.c.bf16 (!%p1247_p6), %v983_v14, %v982_v13  ;;  %v985_v18 = vld [vmem:[#allocation14 + $0x118] sm:$0xff] (!%p1247_p6)  ;;  %v2072_v19 = vmov (!%p1247_p6), 0.0   ;;  %v986_v21 = vld [vmem:[#allocation14 + $0x120] sm:$0xff] (!%p1247_p6)  ;;  %v987_v22 = vld [vmem:[#allocation14 + $0x128] sm:$0xff] (!%p1247_p6)  ;;  %v1080_v50 = vsub.s32 (!%p1247_p6), 0, %v2264_v2  ;;  %v2073_v51 = vmov (!%p1247_p6), 0  }
 0x5db   : > { %1578 = vmatprep.mubr.msk.f32.mxu0 (!%p1247_p6), %vm2071_vm6, %v2072_v19  ;;  %v1705_v20 = vpack.c.bf16 (!%p1247_p6), %v985_v18, %v984_v15  ;;  %v1708_v23 = vpack.c.bf16 (!%p1247_p6), %v987_v22, %v986_v21  ;;  %v988_v24 = vld [vmem:[#allocation14 + $0x130] sm:$0xff] (!%p1247_p6)  ;;  %v989_v25 = vld [vmem:[#allocation14 + $0x138] sm:$0xff] (!%p1247_p6)  ;;  %v1259_v27 = vld [vmem:[#allocation7] ss:$0 sm:$0xff] (!%p1247_p6) }
 0x5dc   : > { %1703 = vmatpush3.bf16.msra.mxu0 (!%p1247_p6), %v1702_v17  ;;  %v967_v26 = vld [vmem:[#allocation3] sm:$0xff] (!%p1247_p6)  ;;  %v1711_v28 = vpack.c.bf16 (!%p1247_p6), %v989_v25, %v988_v24  ;;  %v990_v29 = vld [vmem:[#allocation14 + $0x140] sm:$0xff] (!%p1247_p6)  ;;  %v991_v30 = vld [vmem:[#allocation14 + $0x148] sm:$0xff] (!%p1247_p6) }
 0x5dd   : > { %1704 = vmatprep.subr.bf16.mxu0 (!%p1247_p6), %v2070_v16  ;;  %v973_v31 = vmul.f32 (!%p1247_p6), %v1259_v27, %v967_v26  ;;  %v1714_v33 = vpack.c.bf16 (!%p1247_p6), %v991_v30, %v990_v29  ;;  %v992_v34 = vld [vmem:[#allocation14 + $0x150] sm:$0xff] (!%p1247_p6)  ;;  %v993_v35 = vld [vmem:[#allocation14 + $0x158] sm:$0xff] (!%p1247_p6)  ;;  %v994_v38 = vld [vmem:[#allocation14 + $0x160] sm:$0xff] (!%p1247_p6) }
 0x5de   : > { %v1717_v37 = vpack.c.bf16 (!%p1247_p6), %v993_v35, %v992_v34  ;;  %v995_v39 = vld [vmem:[#allocation14 + $0x168] sm:$0xff] (!%p1247_p6)  ;;  %v996_v40 = vld [vmem:[#allocation14 + $0x170] sm:$0xff] (!%p1247_p6)  ;;  %v997_v41 = vld [vmem:[#allocation14 + $0x178] sm:$0xff] (!%p1247_p6) }
 0x5df   : > { %v1260_v32 = vld [vmem:[#allocation7 + $0x1] ss:$0 sm:$0xff] (!%p1247_p6)  ;;  %v1720_v3 = vpack.c.bf16 (!%p1247_p6), %v995_v39, %v994_v38  ;;  %v1723_v42 = vpack.c.bf16 (!%p1247_p6), %v997_v41, %v996_v40  ;;  %v1261_v44 = vld [vmem:[%s2424_s4 + $0x4] ss:$0 sm:$0xff] (!%p1247_p6)  ;;  %v1073_v46 = vld [vmem:[%s2424_s4 + $0x5] sm:$0x1] (!%p1247_p6) }
 0x5e0   : > { %1706 = vmatpush3.bf16.msra.mxu0 %v1705_v20  ;;  %v979_v36 = vadd.f32 %v1260_v32, %v973_v31  ;;  %vm1074_vm7 = vcmp.gt.f32.partialorder %v1073_v46, 0.5 }
 0x5e1   : > { %1707 = vmatprep.subr.bf16.mxu0 %v2070_v16  ;;  %v1077_v52 = vsel %vm1074_vm7, 1, %v2073_v51 }
 0x5e2   : > { %1836 = vtanh.f32 %v979_v36  ;;  %v1081_v53 = vrot.slane %v1077_v52, %v1080_v50 }
 0x5e4   : > { %1709 = vmatpush3.bf16.msra.mxu0 %v1708_v23  ;;  %vm1082_vm8 = vcmp.eq.s32.totalorder %v1081_v53, 1 }
 0x5e5   : > { %1710 = vmatprep.subr.bf16.mxu0 %v2070_v16 }
 0x5e8   : > { %1712 = vmatpush3.bf16.msra.mxu0 %v1711_v28 }
 0x5e9   : > { %1713 = vmatprep.subr.bf16.mxu0 %v2070_v16 }
 0x5ec   : > { %1715 = vmatpush3.bf16.msra.mxu0 %v1714_v33  ;;  %v1837_v43 = vpop.eup %1836 }
 0x5ed   : > { %1716 = vmatprep.subr.bf16.mxu0 %v2070_v16 }
 0x5f0   : > { %1718 = vmatpush3.bf16.msra.mxu0 %v1717_v37 }
 0x5f1   : > { %1719 = vmatprep.subr.bf16.mxu0 %v2070_v16 }
 0x5f4   : > { %1721 = vmatpush3.bf16.msra.mxu0 %v1720_v3 }
 0x5f5   : > { %1722 = vmatprep.subr.bf16.mxu0 %v2070_v16 }
 0x5f8   : > { %1724 = vmatpush3.bf16.msra.mxu0 %v1723_v42 }
 0x5fb   : > { %1579 = vmatmul.mubr.f32.vlgmr.msra.gmra.mrb[0].mxu0 %v1837_v43 }
 0x6ce   : > { %v1069_v45 = vpop.f32.mrb[0].mxu0 }
 0x6cf   : > { %v1070_v47 = vadd.f32 %v1261_v44, %v1069_v45  ;;  %v1580_v48 = vpop.f32.mrb[1].mxu0 }
 0x6d1   : > { %v1075_v49 = vmul.f32 1.442695, %v1070_v47 }
 0x6d3   : > { %1838 = vpow2.f32 %v1075_v49 }
 0x6dd   : > { %v1839_v54 = vpop.eup %1838 }
 0x6de   : > { %v1083_v55 = vsel %vm1082_vm8, %v1839_v54, %v1070_v47 }
 0x6df   : > { %1084 = vst [vmem:[#allocation17] sm:$0xff] %v1083_v55 }
 0x6e0 PF: > { %p2356_p0 = scmp.eq.s32.totalorder %s1227_s24, 2  ;;  %s2074_s7 = smov [#allocation16]  }
 0x6e1   : > { %s1094_s8 = sshll.u32 %s2074_s7, 4  ;;  %s2075_s9 = smov [#allocation17]   ;;  %s1095_s8 = int_to_ptr.vmem [resolvable:$true] %s1094_s8 }
 0x6e2   : > { %s1107_s25 = sshll.u32 %s2075_s9, 4  ;;  %s1952_s26 = scalar_lea.vmem %s1095_s8, 128  ;;  %s2360_s25 = int_to_ptr.vmem [resolvable:$true] %s1107_s25 }
 0x6e3   : > { %p1953_p1 = scmp.ne.s32.totalorder %s1095_s8, %s1952_s26  ;;  %p1959_p9 = scmp.lt.s32.totalorder %s1095_s8, %s1095_s8 }
 0x6e4   : > { %p1960_p3 = scmp.lt.s32.totalorder %s1952_s26, %s1952_s26 }
 0x6e5   : > { %p1954_p4 = pnand %p1953_p1, %p2356_p0 }
 0x6e6   : > { %p1961_p8 = por %p1960_p3, %p1959_p9 }
 0x6e7   : > { %p1955_p7 = pneg %p1954_p4 }
 0x6e9   : > { %p1962_p5 = pnand %p1961_p8, %p1955_p7 }
 0x6eb   : > { %1965 = shalt.err (!%p1962_p5)
}
 0x6ec   : > { %s1966_s15 = scalar_lea.hbm %s2425_s5, 128 }
 0x6ed   : > { %p1967_p2 = scmp.ne.s32.totalorder %s2425_s5, %s1966_s15  ;;  %p1972_p12 = scmp.lt.u32.totalorder %s1966_s15, %s2425_s5 }
 0x6ef   : > { %p1968_p10 = pnand %p1967_p2, %p2356_p0 }
 0x6f1   : > { %p1969_p11 = pneg %p1968_p10 }
 0x6f3   : > { %p1974_p13 = pnand %p1972_p12, %p1969_p11 }
 0x6f5   : > { %1977 = shalt.err (!%p1974_p13)
}
 0x6f6   : > { %1742 = dma.vmem_to_hbm [thread:$0]  (%p2356_p0), %s1095_s8, 128, %s2425_s5, [#allocation10]  }
 0x6f7   : > { %s1978_s12 = scalar_lea.vmem %s2360_s25, 128  ;;  %p1985_p7 = scmp.lt.s32.totalorder %s2360_s25, %s2360_s25 }
 0x6f8   : > { %p1979_p6 = scmp.ne.s32.totalorder %s2360_s25, %s1978_s12  ;;  %p1986_p9 = scmp.lt.s32.totalorder %s1978_s12, %s1978_s12 }
 0x6fa   : > { %p1980_p1 = pnand %p1979_p6, %p2356_p0  ;;  %p1987_p3 = por %p1986_p9, %p1985_p7 }
 0x6fc   : > { %p1981_p4 = pneg %p1980_p1 }
 0x6fe   : > { %p1988_p8 = pnand %p1987_p3, %p1981_p4 }
 0x700   : > { %1991 = shalt.err (!%p1988_p8)
}
 0x701   : > { %s1992_s14 = scalar_lea.hbm %s2426_s6, 128 }
 0x702   : > { %p1993_p5 = scmp.ne.s32.totalorder %s2426_s6, %s1992_s14  ;;  %p1998_p11 = scmp.lt.u32.totalorder %s1992_s14, %s2426_s6 }
 0x704   : > { %p1994_p2 = pnand %p1993_p5, %p2356_p0 }
 0x706   : > { %p1995_p10 = pneg %p1994_p2 }
 0x708   : > { %p2000_p12 = pnand %p1998_p11, %p1995_p10 }
 0x70a   : > { %2003 = shalt.err (!%p2000_p12)
}
 0x70b   : > { %1744 = dma.vmem_to_hbm [thread:$0]  (%p2356_p0), %s2360_s25, 128, %s2426_s6, [#allocation18]  }
 0x70c   : > { %2029 = dma.done.wait (%p2356_p0), [#allocation10], 128  }
 0x70d   : > { %2031 = vsyncadd (%p2356_p0), [#allocation10], 4294967168 }
 0x70e   : > { %2033 = dma.done.wait (%p2356_p0), [#allocation18], 128  }
 0x70f   : > { %2035 = vsyncadd (%p2356_p0), [#allocation18], 4294967168 }
 0x710 PF: > { %s22_s23 = sadd.s32 1, %s2046_s23   ;;  %s2440_s21 = smov %s2042_s22 }
 0x711   : > { %p19_p13 = scmp.ge.s32.totalorder %s22_s23, 5   ;;  %s2441_s22 = smov %s2443_s30 }
 0x713   :  { %21 = sbr.rel (!%p19_p13) target bundleno = 6 (0x6), region = 143 }
 0x71a   :  { %1124 = vsyncpa [#allocation9], 1 }
 0x71b   :  { %1126 = vsyncpa [#allocation9 + $0x1], 1 }
 0x71c   :  { %1127 = vsyncpa [#allocation12], 1 }
 0x71d   :  { %1128 = vsyncpa [#allocation15], 1 }
 0x71e   :  { %1129 = vsyncpa [#allocation10], 1 }
 0x71f   :  { %1131 = vsyncpa [#allocation10 + $0x1], 1 }
 0x720   :  { %1132 = vsyncpa [#allocation18], 1 }

</bundles_post_ra>
